<compile_context>
chip_gen: v5e
topology: v5e:2x2
jax: 0.10.0
libtpu: 0.0.40
codegen_flags: <defaults>
</compile_context>

<pallas_src>
import functools

import jax
import jax.numpy as jnp
import numpy as np
from jax.experimental import pallas as pl
from jax.experimental.pallas import tpu as pltpu


def _destroy(h):
    """Truncated bosonic annihilation operator (float64)."""
    return np.diag(np.sqrt(np.arange(1, h, dtype=np.float64)), k=1)


def _lindblad_rk4_kernel(u_ref, s_ref, r_ref, bds_ref, out_ref,
                         rho_ref, sign_ref, *,
                         dt, n, t_total, k_fold, substeps, mxu_dtype):
    """One grid step = k_fold RK4 Lindblad steps on the resident rho slab."""
    i = pl.program_id(0)
    two_n = 2 * n
    f32 = jnp.float32

    @pl.when(i == 0)
    def _init():
        # psi0 = |0,0>  ->  rho0 = e0 e0^T  (real part at column 0).
        row = jax.lax.broadcasted_iota(jnp.int32, (n, two_n), 0)
        col = jax.lax.broadcasted_iota(jnp.int32, (n, two_n), 1)
        rho_ref[...] = jnp.where((row == 0) & (col == 0), f32(1.0), f32(0.0))
        # [ +1 ... +1 | -1 ... -1 ] : applied after the half-lane roll this is
        # the "-i" of the commutator in slab form.  Built once into scratch.
        sign_ref[...] = jnp.where(col < n, f32(1.0), f32(-1.0))

    h = dt / substeps
    h2 = 0.5 * h
    h6 = h / 6.0

    def mm(a, b):
        return jnp.dot(a, b, preferred_element_type=jnp.float32)

    def rhs(w, c):
        # w = [re | im] (N, 2N) float32.  All matmul operands are either static
        # (pre-cast at __init__, read from VMEM at point of use) or depend only
        # on wb, so the MXU chain per stage is {P, Q} -> sandwich (2-deep).
        wb = w.astype(mxu_dtype)
        p = mm(s_ref[...], wb)           # (5N,2N): [Hs w; Hd w; L1 w; L2 w; -M/2 w]
        q = mm(wb, r_ref[...])           # (N,6N): [w Hs | w Hd | w (-M/2)] slab pairs
        p_hs = p[0:n]
        p_hd = p[n:2 * n]
        p_l1 = p[2 * n:3 * n]
        p_l2 = p[3 * n:4 * n]
        p_mh = p[4 * n:5 * n]
        q_hs = q[:, 0:two_n]
        q_hd = q[:, two_n:2 * two_n]
        q_mh = q[:, 2 * two_n:3 * two_n]
        # -i [H(c), rho] with H(c) = Hs + c Hd, mixed *after* the static matmuls.
        comm = (p_hs - q_hs) + c * (p_hd - q_hd)          # [Re | Im] of [H, rho]
        comm_i = pltpu.roll(comm, shift=n, axis=1) * sign_ref[...]   # [Im | -Re]
        # L1 rho L1^T + L2 rho L2^T as one fused K = 4N matmul (full-depth on
        # v6e/v7x, splits into two passes on v5e which is neutral there).
        pcat = jnp.concatenate([p_l1, p_l2], axis=1).astype(mxu_dtype)  # (N,4N)
        sand = mm(pcat, bds_ref[...])                      # (N, 2N)
        # -0.5 * (M rho + rho M) is already folded into p_mh / q_mh.
        return comm_i + sand + (p_mh + q_mh)

    def rk4(w, c_first, c_rest):
        # Incremental accumulation keeps only {w, acc, k} live across stages.
        k = rhs(w, c_first)
        acc = k
        k = rhs(w + h2 * k, c_rest)
        acc = acc + 2.0 * k
        k = rhs(w + h2 * k, c_rest)
        acc = acc + 2.0 * k
        k = rhs(w + h * k, c_rest)
        return w + h6 * (acc + k)

    def fold_body(j, carry):
        # mesolve returns one state per requested time point, including t = 0.
        out_ref[j] = rho_ref[...]
        t = i * k_fold + j

        @pl.when(t < t_total - 1)
        def _step():
            c0 = u_ref[t]          # coefficient exactly at t_k
            c1 = u_ref[t + 1]      # coefficient inside (t_k, t_{k+1}]
            w = rho_ref[...]
            if substeps == 1:
                w = rk4(w, c0, c1)
            else:
                def _sub(s, w_s):
                    cf = jnp.where(s == 0, c0, c1)
                    return rk4(w_s, cf, c1)
                w = jax.lax.fori_loop(0, substeps, _sub, w)
            rho_ref[...] = w

        return carry

    jax.lax.fori_loop(0, k_fold, fold_body, 0)


class CQOscResPallas:
    """JAX/Pallas re-implementation of CQOscRes (forward pass only)."""

    def __init__(self, eps_0, input_dim, omega, kappa, coupling, output_dim,
                 time, inference, h_truncate=8, mxu_dtype=jnp.bfloat16,
                 substeps=1):
        self.eps_0 = float(eps_0)
        self.input_dim = input_dim
        self.h_truncate = h_truncate
        self.omega = omega
        self.kappa = kappa
        self.coupling = float(coupling)
        self.time = np.linspace(0.0, time, inference)
        self.state_dim = h_truncate ** 2
        self.mxu_dtype = mxu_dtype
        self.substeps = int(substeps)

        h = h_truncate
        d = _destroy(h)
        eye = np.eye(h, dtype=np.float64)
        a = np.kron(d, eye)            # qt.tensor(destroy(h), qeye(h))
        b = np.kron(eye, d)            # qt.tensor(qeye(h), destroy(h))
        ad, bd = a.T, b.T              # real operators -> dagger == transpose

        Hs = (omega[0] * ad @ a + omega[1] * bd @ b
              + self.coupling * (a @ bd + ad @ b))
        Hd = self.eps_0 * np.sqrt(2.0 * kappa[0]) * (a + ad)
        L1 = np.sqrt(kappa[0]) * a
        L2 = np.sqrt(kappa[1]) * b
        M = L1.T @ L1 + L2.T @ L2
        self.np_ops = (Hs, Hd, L1, L2, M)      # float64, for reference checks

        N = self.state_dim
        Z = np.zeros((N, N))
        Mh = -0.5 * M                          # anticommutator scale folded in
        # Fully static operator bundles, pre-cast once to the MXU dtype.
        S = np.concatenate([Hs, Hd, L1, L2, Mh], axis=0)            # (5N, N)
        R = np.block([[Hs, Z, Hd, Z, Mh, Z],
                      [Z, Hs, Z, Hd, Z, Mh]])                        # (2N, 6N)
        BDS = np.block([[L1.T, Z],
                        [Z, L1.T],
                        [L2.T, Z],
                        [Z, L2.T]])                                  # (4N, 2N)
        self.S = jnp.asarray(S, mxu_dtype)
        self.R = jnp.asarray(R, mxu_dtype)
        self.BDS = jnp.asarray(BDS, mxu_dtype)

        # Deterministic readout parameters (nn.Linear(state_dim*2, output_dim));
        # not used by forward(), kept for parity with the module's __init__.
        # A consumer of the [re|im] slab layout (forward(..., return_slab=True))
        # should permute its readout columns once instead of interleaving the
        # kernel output.
        key = jax.random.PRNGKey(42)
        fan_in = self.state_dim * 2
        bound = 1.0 / np.sqrt(fan_in)
        self.readout_w = jax.random.uniform(key, (output_dim, fan_in),
                                            jnp.float32, -bound, bound)
        self.readout_b = jnp.zeros((output_dim,), jnp.float32)

    def forward(self, u, return_slab=False):
        u = jnp.asarray(u, jnp.float32)
        T = int(u.shape[0])
        if T != self.time.shape[0]:
            raise ValueError("len(u) must equal the number of inference time points")
        N = self.state_dim
        dt = float(self.time[1] - self.time[0]) if T > 1 else 0.0

        # Fold several RK4 steps per grid iteration (must divide T).  The fold
        # body is a fori_loop, so a large k_fold costs no instruction footprint.
        k_fold = next(k for k in (64, 32, 16, 8, 4, 2, 1) if T % k == 0)

        kernel = functools.partial(_lindblad_rk4_kernel, dt=dt, n=N, t_total=T,
                                   k_fold=k_fold, substeps=self.substeps,
                                   mxu_dtype=self.mxu_dtype)

        smem_spec = pl.BlockSpec(memory_space=pltpu.MemorySpace.SMEM)

        def const_spec(shape):
            # Constant block index -> the operator bundles are fetched once and
            # never re-DMA'd across grid iterations.
            return pl.BlockSpec(shape, lambda i: (0,) * len(shape))

        out = pl.pallas_call(
            kernel,
            out_shape=jax.ShapeDtypeStruct((T, N, 2 * N), jnp.float32),
            grid_spec=pltpu.PrefetchScalarGridSpec(
                num_scalar_prefetch=0,
                grid=(T // k_fold,),
                in_specs=[smem_spec,
                          const_spec((5 * N, N)),
                          const_spec((2 * N, 6 * N)),
                          const_spec((4 * N, 2 * N))],
                out_specs=pl.BlockSpec((k_fold, N, 2 * N), lambda i: (i, 0, 0)),
                scratch_shapes=[pltpu.VMEM((N, 2 * N), jnp.float32),   # rho slab
                                pltpu.VMEM((N, 2 * N), jnp.float32)]), # sign slab
            compiler_params=pltpu.CompilerParams(
                dimension_semantics=("arbitrary",)),
        )(u, self.S, self.R, self.BDS)

        if return_slab:
            # Lane-dense [re | im] layout, no extra HBM pass.
            return out.reshape(T, 2 * N * N)

        # torch.view_as_real(rho).flatten() layout (original module semantics).
        re = out[:, :, :N].reshape(T, N * N)
        im = out[:, :, N:].reshape(T, N * N)
        return jnp.stack([re, im], axis=-1).reshape(T, 2 * N * N)


def _reference_states(Hs, Hd, L1, L2, M, u, time_grid):
    """Pure NumPy mirror of the kernel's fixed-step RK4 Lindblad integration."""
    n = Hs.shape[0]
    dt = float(time_grid[1] - time_grid[0]) if len(time_grid) > 1 else 0.0
    u = np.asarray(u, np.float64)

    def rhs(rho, c):
        H = Hs + c * Hd
        comm = H @ rho - rho @ H
        diss = (L1 @ rho @ L1.T + L2 @ rho @ L2.T
                - 0.5 * (M @ rho + rho @ M))
        return -1j * comm + diss

    rho = np.zeros((n, n), np.complex128)
    rho[0, 0] = 1.0
    states = []
    for t in range(len(u)):
        states.append(
            np.stack([rho.real, rho.imag], axis=-1).reshape(-1).astype(np.float32))
        if t < len(u) - 1:
            c0, c1 = u[t], u[t + 1]
            k1 = rhs(rho, c0)
            k2 = rhs(rho + 0.5 * dt * k1, c1)
            k3 = rhs(rho + 0.5 * dt * k2, c1)
            k4 = rhs(rho + dt * k3, c1)
            rho = rho + (dt / 6.0) * (k1 + 2.0 * k2 + 2.0 * k3 + k4)
    return np.stack(states)


if __name__ == "__main__":
    # Module-default truncation: h_truncate=8 -> N=64, feature dim per step =
    # 64*64*2 = 8192; 8 requested time points over t in [0, 0.5].
    h_truncate = 8
    inference = 8
    cfg = dict(eps_0=1.0, input_dim=1, omega=(1.0, 1.3), kappa=(0.1, 0.2),
               coupling=0.05, output_dim=2, time=0.5, inference=inference,
               h_truncate=h_truncate)

    key = jax.random.PRNGKey(0)
    u = jax.random.uniform(key, (inference,), jnp.float32, -1.0, 1.0)

    # Default (bf16 MXU inputs) model.
    model = CQOscResPallas(**cfg)
    states = jax.block_until_ready(model.forward(u))

    N = model.state_dim
    assert states.shape == (inference, N * N * 2)
    assert states.dtype == jnp.float32
    assert bool(jnp.all(jnp.isfinite(states)))
    # initial state: rho0[0,0].re == 1, everything else 0
    assert abs(float(states[0, 0]) - 1.0) < 1e-6
    assert float(jnp.max(jnp.abs(states[0, 1:]))) < 1e-6
    # Lindblad evolution preserves tr(rho) = 1 (up to bf16 operator rounding).
    rho_re = np.asarray(states).reshape(inference, N, N, 2)[..., 0]
    traces = np.trace(rho_re, axis1=1, axis2=2)
    assert float(np.max(np.abs(traces - 1.0))) < 0.1

    # The slab output path must agree exactly with the interleaved path.
    slab = jax.block_until_ready(model.forward(u, return_slab=True))
    slab_np = np.asarray(slab).reshape(inference, N, 2 * N)
    inter_np = np.asarray(states).reshape(inference, N, N, 2)
    assert np.array_equal(slab_np[:, :, :N], inter_np[..., 0])
    assert np.array_equal(slab_np[:, :, N:], inter_np[..., 1])

    # Exact-arithmetic check: with f32 MXU operands the kernel must match a
    # NumPy reference of the identical fixed-step RK4 integration.
    model_f32 = CQOscResPallas(**cfg, mxu_dtype=jnp.float32)
    states_f32 = jax.block_until_ready(model_f32.forward(u))
    ref = _reference_states(*model_f32.np_ops, np.asarray(u), model_f32.time)
    assert float(np.max(np.abs(np.asarray(states_f32) - ref))) < 1e-3

    print("KERNEL_OK")
</pallas_src>

<mosaic_0001>
module attributes {stable_mosaic.version = 11 : i64} {
  func.func @_lindblad_rk4_kernel(%arg0: i32, %arg1: memref<8xf32, #tpu.memory_space<smem>>, %arg2: memref<320x64xbf16, #tpu.memory_space<vmem>>, %arg3: memref<128x384xbf16, #tpu.memory_space<vmem>>, %arg4: memref<256x128xbf16, #tpu.memory_space<vmem>>, %arg5: memref<8x64x128xf32, #tpu.memory_space<vmem>>, %arg6: memref<64x128xf32, #tpu.memory_space<vmem>>, %arg7: memref<64x128xf32, #tpu.memory_space<vmem>>) attributes {dimension_semantics = [#tpu.dimension_semantics<arbitrary>], iteration_bounds = array<i64: 1>, scalar_prefetch = 0 : i64, scratch_operands = 2 : i64, tpu.core_type = #tpu.core_type<tc>, window_params = [{transform_indices = @transform_0, window_bounds = array<i64: 8>}, {pipeline_mode = #tpu.pipeline_mode<synchronous>, transform_indices = @transform_1, window_bounds = array<i64: 320, 64>}, {pipeline_mode = #tpu.pipeline_mode<synchronous>, transform_indices = @transform_2, window_bounds = array<i64: 128, 384>}, {pipeline_mode = #tpu.pipeline_mode<synchronous>, transform_indices = @transform_3, window_bounds = array<i64: 256, 128>}, {transform_indices = @transform_4, window_bounds = array<i64: 8, 64, 128>}]} {
    %c0_i32 = arith.constant 0 : i32
    %0 = arith.cmpi eq, %arg0, %c0_i32 : i32
    %1 = arith.extui %0 : i1 to i32
    %c0_i32_0 = arith.constant 0 : i32
    %2 = arith.cmpi ne, %1, %c0_i32_0 : i32
    scf.if %2 {
      %4 = tpu.iota {dimensions = array<i32: 0>} : vector<64x128xi32>
      %5 = tpu.iota {dimensions = array<i32: 1>} : vector<64x128xi32>
      %c0_i32_3 = arith.constant 0 : i32
      %6 = vector.broadcast %c0_i32_3 : i32 to vector<64x128xi32>
      %7 = arith.cmpi eq, %4, %6 : vector<64x128xi32>
      %c0_i32_4 = arith.constant 0 : i32
      %8 = vector.broadcast %c0_i32_4 : i32 to vector<64x128xi32>
      %9 = arith.cmpi eq, %5, %8 : vector<64x128xi32>
      %10 = arith.andi %7, %9 : vector<64x128xi1>
      %cst = arith.constant 1.000000e+00 : f32
      %cst_5 = arith.constant 0.000000e+00 : f32
      %11 = vector.broadcast %cst : f32 to vector<64x128xf32>
      %12 = vector.broadcast %cst_5 : f32 to vector<64x128xf32>
      %13 = arith.select %10, %11, %12 : vector<64x128xi1>, vector<64x128xf32>
      %c0 = arith.constant 0 : index
      %c0_6 = arith.constant 0 : index
      %14 = vector.load %arg6[%c0, %c0_6] : memref<64x128xf32, #tpu.memory_space<vmem>>, vector<64x128xf32>
      tpu.vector_store %arg6[%c0, %c0_6], %13 {strides = array<i32>} : memref<64x128xf32, #tpu.memory_space<vmem>>, vector<64x128xf32>,
      %c64_i32 = arith.constant 64 : i32
      %15 = vector.broadcast %c64_i32 : i32 to vector<64x128xi32>
      %16 = arith.cmpi slt, %5, %15 : vector<64x128xi32>
      %cst_7 = arith.constant 1.000000e+00 : f32
      %cst_8 = arith.constant -1.000000e+00 : f32
      %17 = vector.broadcast %cst_7 : f32 to vector<64x128xf32>
      %18 = vector.broadcast %cst_8 : f32 to vector<64x128xf32>
      %19 = arith.select %16, %17, %18 : vector<64x128xi1>, vector<64x128xf32>
      %c0_9 = arith.constant 0 : index
      %c0_10 = arith.constant 0 : index
      %20 = vector.load %arg7[%c0_9, %c0_10] : memref<64x128xf32, #tpu.memory_space<vmem>>, vector<64x128xf32>
      tpu.vector_store %arg7[%c0_9, %c0_10], %19 {strides = array<i32>} : memref<64x128xf32, #tpu.memory_space<vmem>>, vector<64x128xf32>,
    } else {
    }
    %c0_i32_1 = arith.constant 0 : i32
    %c8_i32 = arith.constant 8 : i32
    %3 = arith.addi %c0_i32_1, %c8_i32 : i32
    %c1_i32 = arith.constant 1 : i32
    scf.for %arg8 = %c0_i32_1 to %3 step %c1_i32  : i32 {
      %c0 = arith.constant 0 : index
      %c0_3 = arith.constant 0 : index
      %4 = vector.load %arg6[%c0, %c0_3] : memref<64x128xf32, #tpu.memory_space<vmem>>, vector<64x128xf32>
      %5 = arith.index_cast %arg8 : i32 to index
      %c0_4 = arith.constant 0 : index
      %c0_5 = arith.constant 0 : index
      %6 = vector.load %arg5[%5, %c0_4, %c0_5] : memref<8x64x128xf32, #tpu.memory_space<vmem>>, vector<1x64x128xf32>
      %7 = vector.shape_cast %6 : vector<1x64x128xf32> to vector<64x128xf32>
      %8 = vector.shape_cast %4 : vector<64x128xf32> to vector<1x64x128xf32>
      tpu.vector_store %arg5[%5, %c0_4, %c0_5], %8 {strides = array<i32>} : memref<8x64x128xf32, #tpu.memory_space<vmem>>, vector<1x64x128xf32>,
      %c8_i32_6 = arith.constant 8 : i32
      %9 = arith.muli %arg0, %c8_i32_6 : i32
      %10 = arith.addi %9, %arg8 : i32
      %c7_i32 = arith.constant 7 : i32
      %11 = arith.cmpi slt, %10, %c7_i32 : i32
      %12 = arith.extui %11 : i1 to i32
      %c0_i32_7 = arith.constant 0 : i32
      %13 = arith.cmpi ne, %12, %c0_i32_7 : i32
      scf.if %13 {
        %14 = arith.index_cast %10 : i32 to index
        %15 = memref.load %arg1[%14] : memref<8xf32, #tpu.memory_space<smem>>
        %c1_i32_8 = arith.constant 1 : i32
        %16 = arith.addi %10, %c1_i32_8 : i32
        %17 = arith.index_cast %16 : i32 to index
        %18 = memref.load %arg1[%17] : memref<8xf32, #tpu.memory_space<smem>>
        %c0_9 = arith.constant 0 : index
        %c0_10 = arith.constant 0 : index
        %19 = vector.load %arg6[%c0_9, %c0_10] : memref<64x128xf32, #tpu.memory_space<vmem>>, vector<64x128xf32>
        %20 = arith.truncf %19 : vector<64x128xf32> to vector<64x128xbf16>
        %c0_11 = arith.constant 0 : index
        %c0_12 = arith.constant 0 : index
        %21 = vector.load %arg2[%c0_11, %c0_12] : memref<320x64xbf16, #tpu.memory_space<vmem>>, vector<320x64xbf16>
        %cst = arith.constant dense<0.000000e+00> : vector<320x128xf32>
        %22 = tpu.matmul %21, %20, %cst {dimension_numbers = #tpu.dot_dimension_numbers<[1], [0], [0], [1], [0, 0, 1, 1], [], []>} : vector<320x64xbf16>, vector<64x128xbf16>, vector<320x128xf32> -> vector<320x128xf32>
        %c0_13 = arith.constant 0 : index
        %c0_14 = arith.constant 0 : index
        %23 = vector.load %arg3[%c0_13, %c0_14] : memref<128x384xbf16, #tpu.memory_space<vmem>>, vector<128x384xbf16>
        %cst_15 = arith.constant dense<0.000000e+00> : vector<64x384xf32>
        %24 = tpu.matmul %20, %23, %cst_15 {dimension_numbers = #tpu.dot_dimension_numbers<[1], [0], [0], [1], [0, 0, 1, 1], [], []>} : vector<64x128xbf16>, vector<128x384xbf16>, vector<64x384xf32> -> vector<64x384xf32>
        %25 = vector.extract_strided_slice %22 {offsets = [0, 0], sizes = [64, 128], strides = [1, 1]} : vector<320x128xf32> to vector<64x128xf32>
        %26 = vector.extract_strided_slice %22 {offsets = [64, 0], sizes = [64, 128], strides = [1, 1]} : vector<320x128xf32> to vector<64x128xf32>
        %27 = vector.extract_strided_slice %22 {offsets = [128, 0], sizes = [64, 128], strides = [1, 1]} : vector<320x128xf32> to vector<64x128xf32>
        %28 = vector.extract_strided_slice %22 {offsets = [192, 0], sizes = [64, 128], strides = [1, 1]} : vector<320x128xf32> to vector<64x128xf32>
        %29 = vector.extract_strided_slice %22 {offsets = [256, 0], sizes = [64, 128], strides = [1, 1]} : vector<320x128xf32> to vector<64x128xf32>
        %30 = vector.extract_strided_slice %24 {offsets = [0, 0], sizes = [64, 128], strides = [1, 1]} : vector<64x384xf32> to vector<64x128xf32>
        %31 = vector.extract_strided_slice %24 {offsets = [0, 128], sizes = [64, 128], strides = [1, 1]} : vector<64x384xf32> to vector<64x128xf32>
        %32 = vector.extract_strided_slice %24 {offsets = [0, 256], sizes = [64, 128], strides = [1, 1]} : vector<64x384xf32> to vector<64x128xf32>
        %33 = arith.subf %25, %30 : vector<64x128xf32>
        %34 = arith.subf %26, %31 : vector<64x128xf32>
        %35 = vector.broadcast %15 : f32 to vector<64x128xf32>
        %36 = arith.mulf %35, %34 : vector<64x128xf32>
        %37 = arith.addf %33, %36 : vector<64x128xf32>
        %c64_i32 = arith.constant 64 : i32
        %38 = tpu.dynamic_rotate %37 by %c64_i32 dim 1 : vector<64x128xf32>, i32 -> vector<64x128xf32>
        %c0_16 = arith.constant 0 : index
        %c0_17 = arith.constant 0 : index
        %39 = vector.load %arg7[%c0_16, %c0_17] : memref<64x128xf32, #tpu.memory_space<vmem>>, vector<64x128xf32>
        %40 = arith.mulf %38, %39 : vector<64x128xf32>
        %41 = tpu.concatenate %27, %28 in 1 : vector<64x128xf32>, vector<64x128xf32> -> vector<64x256xf32>
        %42 = arith.truncf %41 : vector<64x256xf32> to vector<64x256xbf16>
        %c0_18 = arith.constant 0 : index
        %c0_19 = arith.constant 0 : index
        %43 = vector.load %arg4[%c0_18, %c0_19] : memref<256x128xbf16, #tpu.memory_space<vmem>>, vector<256x128xbf16>
        %cst_20 = arith.constant dense<0.000000e+00> : vector<64x128xf32>
        %44 = tpu.matmul %42, %43, %cst_20 {dimension_numbers = #tpu.dot_dimension_numbers<[1], [0], [0], [1], [0, 0, 1, 1], [], []>} : vector<64x256xbf16>, vector<256x128xbf16>, vector<64x128xf32> -> vector<64x128xf32>
        %45 = arith.addf %40, %44 : vector<64x128xf32>
        %46 = arith.addf %29, %32 : vector<64x128xf32>
        %47 = arith.addf %45, %46 : vector<64x128xf32>
        %cst_21 = arith.constant 0.0357142873 : f32
        %48 = vector.broadcast %cst_21 : f32 to vector<64x128xf32>
        %49 = arith.mulf %48, %47 : vector<64x128xf32>
        %50 = arith.addf %19, %49 : vector<64x128xf32>
        %51 = arith.truncf %50 : vector<64x128xf32> to vector<64x128xbf16>
        %c0_22 = arith.constant 0 : index
        %c0_23 = arith.constant 0 : index
        %52 = vector.load %arg2[%c0_22, %c0_23] : memref<320x64xbf16, #tpu.memory_space<vmem>>, vector<320x64xbf16>
        %cst_24 = arith.constant dense<0.000000e+00> : vector<320x128xf32>
        %53 = tpu.matmul %52, %51, %cst_24 {dimension_numbers = #tpu.dot_dimension_numbers<[1], [0], [0], [1], [0, 0, 1, 1], [], []>} : vector<320x64xbf16>, vector<64x128xbf16>, vector<320x128xf32> -> vector<320x128xf32>
        %c0_25 = arith.constant 0 : index
        %c0_26 = arith.constant 0 : index
        %54 = vector.load %arg3[%c0_25, %c0_26] : memref<128x384xbf16, #tpu.memory_space<vmem>>, vector<128x384xbf16>
        %cst_27 = arith.constant dense<0.000000e+00> : vector<64x384xf32>
        %55 = tpu.matmul %51, %54, %cst_27 {dimension_numbers = #tpu.dot_dimension_numbers<[1], [0], [0], [1], [0, 0, 1, 1], [], []>} : vector<64x128xbf16>, vector<128x384xbf16>, vector<64x384xf32> -> vector<64x384xf32>
        %56 = vector.extract_strided_slice %53 {offsets = [0, 0], sizes = [64, 128], strides = [1, 1]} : vector<320x128xf32> to vector<64x128xf32>
        %57 = vector.extract_strided_slice %53 {offsets = [64, 0], sizes = [64, 128], strides = [1, 1]} : vector<320x128xf32> to vector<64x128xf32>
        %58 = vector.extract_strided_slice %53 {offsets = [128, 0], sizes = [64, 128], strides = [1, 1]} : vector<320x128xf32> to vector<64x128xf32>
        %59 = vector.extract_strided_slice %53 {offsets = [192, 0], sizes = [64, 128], strides = [1, 1]} : vector<320x128xf32> to vector<64x128xf32>
        %60 = vector.extract_strided_slice %53 {offsets = [256, 0], sizes = [64, 128], strides = [1, 1]} : vector<320x128xf32> to vector<64x128xf32>
        %61 = vector.extract_strided_slice %55 {offsets = [0, 0], sizes = [64, 128], strides = [1, 1]} : vector<64x384xf32> to vector<64x128xf32>
        %62 = vector.extract_strided_slice %55 {offsets = [0, 128], sizes = [64, 128], strides = [1, 1]} : vector<64x384xf32> to vector<64x128xf32>
        %63 = vector.extract_strided_slice %55 {offsets = [0, 256], sizes = [64, 128], strides = [1, 1]} : vector<64x384xf32> to vector<64x128xf32>
        %64 = arith.subf %56, %61 : vector<64x128xf32>
        %65 = arith.subf %57, %62 : vector<64x128xf32>
        %66 = vector.broadcast %18 : f32 to vector<64x128xf32>
        %67 = arith.mulf %66, %65 : vector<64x128xf32>
        %68 = arith.addf %64, %67 : vector<64x128xf32>
        %c64_i32_28 = arith.constant 64 : i32
        %69 = tpu.dynamic_rotate %68 by %c64_i32_28 dim 1 : vector<64x128xf32>, i32 -> vector<64x128xf32>
        %c0_29 = arith.constant 0 : index
        %c0_30 = arith.constant 0 : index
        %70 = vector.load %arg7[%c0_29, %c0_30] : memref<64x128xf32, #tpu.memory_space<vmem>>, vector<64x128xf32>
        %71 = arith.mulf %69, %70 : vector<64x128xf32>
        %72 = tpu.concatenate %58, %59 in 1 : vector<64x128xf32>, vector<64x128xf32> -> vector<64x256xf32>
        %73 = arith.truncf %72 : vector<64x256xf32> to vector<64x256xbf16>
        %c0_31 = arith.constant 0 : index
        %c0_32 = arith.constant 0 : index
        %74 = vector.load %arg4[%c0_31, %c0_32] : memref<256x128xbf16, #tpu.memory_space<vmem>>, vector<256x128xbf16>
        %cst_33 = arith.constant dense<0.000000e+00> : vector<64x128xf32>
        %75 = tpu.matmul %73, %74, %cst_33 {dimension_numbers = #tpu.dot_dimension_numbers<[1], [0], [0], [1], [0, 0, 1, 1], [], []>} : vector<64x256xbf16>, vector<256x128xbf16>, vector<64x128xf32> -> vector<64x128xf32>
        %76 = arith.addf %71, %75 : vector<64x128xf32>
        %77 = arith.addf %60, %63 : vector<64x128xf32>
        %78 = arith.addf %76, %77 : vector<64x128xf32>
        %cst_34 = arith.constant 2.000000e+00 : f32
        %79 = vector.broadcast %cst_34 : f32 to vector<64x128xf32>
        %80 = arith.mulf %79, %78 : vector<64x128xf32>
        %81 = arith.addf %47, %80 : vector<64x128xf32>
        %cst_35 = arith.constant 0.0357142873 : f32
        %82 = vector.broadcast %cst_35 : f32 to vector<64x128xf32>
        %83 = arith.mulf %82, %78 : vector<64x128xf32>
        %84 = arith.addf %19, %83 : vector<64x128xf32>
        %85 = arith.truncf %84 : vector<64x128xf32> to vector<64x128xbf16>
        %c0_36 = arith.constant 0 : index
        %c0_37 = arith.constant 0 : index
        %86 = vector.load %arg2[%c0_36, %c0_37] : memref<320x64xbf16, #tpu.memory_space<vmem>>, vector<320x64xbf16>
        %cst_38 = arith.constant dense<0.000000e+00> : vector<320x128xf32>
        %87 = tpu.matmul %86, %85, %cst_38 {dimension_numbers = #tpu.dot_dimension_numbers<[1], [0], [0], [1], [0, 0, 1, 1], [], []>} : vector<320x64xbf16>, vector<64x128xbf16>, vector<320x128xf32> -> vector<320x128xf32>
        %c0_39 = arith.constant 0 : index
        %c0_40 = arith.constant 0 : index
        %88 = vector.load %arg3[%c0_39, %c0_40] : memref<128x384xbf16, #tpu.memory_space<vmem>>, vector<128x384xbf16>
        %cst_41 = arith.constant dense<0.000000e+00> : vector<64x384xf32>
        %89 = tpu.matmul %85, %88, %cst_41 {dimension_numbers = #tpu.dot_dimension_numbers<[1], [0], [0], [1], [0, 0, 1, 1], [], []>} : vector<64x128xbf16>, vector<128x384xbf16>, vector<64x384xf32> -> vector<64x384xf32>
        %90 = vector.extract_strided_slice %87 {offsets = [0, 0], sizes = [64, 128], strides = [1, 1]} : vector<320x128xf32> to vector<64x128xf32>
        %91 = vector.extract_strided_slice %87 {offsets = [64, 0], sizes = [64, 128], strides = [1, 1]} : vector<320x128xf32> to vector<64x128xf32>
        %92 = vector.extract_strided_slice %87 {offsets = [128, 0], sizes = [64, 128], strides = [1, 1]} : vector<320x128xf32> to vector<64x128xf32>
        %93 = vector.extract_strided_slice %87 {offsets = [192, 0], sizes = [64, 128], strides = [1, 1]} : vector<320x128xf32> to vector<64x128xf32>
        %94 = vector.extract_strided_slice %87 {offsets = [256, 0], sizes = [64, 128], strides = [1, 1]} : vector<320x128xf32> to vector<64x128xf32>
        %95 = vector.extract_strided_slice %89 {offsets = [0, 0], sizes = [64, 128], strides = [1, 1]} : vector<64x384xf32> to vector<64x128xf32>
        %96 = vector.extract_strided_slice %89 {offsets = [0, 128], sizes = [64, 128], strides = [1, 1]} : vector<64x384xf32> to vector<64x128xf32>
        %97 = vector.extract_strided_slice %89 {offsets = [0, 256], sizes = [64, 128], strides = [1, 1]} : vector<64x384xf32> to vector<64x128xf32>
        %98 = arith.subf %90, %95 : vector<64x128xf32>
        %99 = arith.subf %91, %96 : vector<64x128xf32>
        %100 = vector.broadcast %18 : f32 to vector<64x128xf32>
        %101 = arith.mulf %100, %99 : vector<64x128xf32>
        %102 = arith.addf %98, %101 : vector<64x128xf32>
        %c64_i32_42 = arith.constant 64 : i32
        %103 = tpu.dynamic_rotate %102 by %c64_i32_42 dim 1 : vector<64x128xf32>, i32 -> vector<64x128xf32>
        %c0_43 = arith.constant 0 : index
        %c0_44 = arith.constant 0 : index
        %104 = vector.load %arg7[%c0_43, %c0_44] : memref<64x128xf32, #tpu.memory_space<vmem>>, vector<64x128xf32>
        %105 = arith.mulf %103, %104 : vector<64x128xf32>
        %106 = tpu.concatenate %92, %93 in 1 : vector<64x128xf32>, vector<64x128xf32> -> vector<64x256xf32>
        %107 = arith.truncf %106 : vector<64x256xf32> to vector<64x256xbf16>
        %c0_45 = arith.constant 0 : index
        %c0_46 = arith.constant 0 : index
        %108 = vector.load %arg4[%c0_45, %c0_46] : memref<256x128xbf16, #tpu.memory_space<vmem>>, vector<256x128xbf16>
        %cst_47 = arith.constant dense<0.000000e+00> : vector<64x128xf32>
        %109 = tpu.matmul %107, %108, %cst_47 {dimension_numbers = #tpu.dot_dimension_numbers<[1], [0], [0], [1], [0, 0, 1, 1], [], []>} : vector<64x256xbf16>, vector<256x128xbf16>, vector<64x128xf32> -> vector<64x128xf32>
        %110 = arith.addf %105, %109 : vector<64x128xf32>
        %111 = arith.addf %94, %97 : vector<64x128xf32>
        %112 = arith.addf %110, %111 : vector<64x128xf32>
        %cst_48 = arith.constant 2.000000e+00 : f32
        %113 = vector.broadcast %cst_48 : f32 to vector<64x128xf32>
        %114 = arith.mulf %113, %112 : vector<64x128xf32>
        %115 = arith.addf %81, %114 : vector<64x128xf32>
        %cst_49 = arith.constant 0.0714285746 : f32
        %116 = vector.broadcast %cst_49 : f32 to vector<64x128xf32>
        %117 = arith.mulf %116, %112 : vector<64x128xf32>
        %118 = arith.addf %19, %117 : vector<64x128xf32>
        %119 = arith.truncf %118 : vector<64x128xf32> to vector<64x128xbf16>
        %c0_50 = arith.constant 0 : index
        %c0_51 = arith.constant 0 : index
        %120 = vector.load %arg2[%c0_50, %c0_51] : memref<320x64xbf16, #tpu.memory_space<vmem>>, vector<320x64xbf16>
        %cst_52 = arith.constant dense<0.000000e+00> : vector<320x128xf32>
        %121 = tpu.matmul %120, %119, %cst_52 {dimension_numbers = #tpu.dot_dimension_numbers<[1], [0], [0], [1], [0, 0, 1, 1], [], []>} : vector<320x64xbf16>, vector<64x128xbf16>, vector<320x128xf32> -> vector<320x128xf32>
        %c0_53 = arith.constant 0 : index
        %c0_54 = arith.constant 0 : index
        %122 = vector.load %arg3[%c0_53, %c0_54] : memref<128x384xbf16, #tpu.memory_space<vmem>>, vector<128x384xbf16>
        %cst_55 = arith.constant dense<0.000000e+00> : vector<64x384xf32>
        %123 = tpu.matmul %119, %122, %cst_55 {dimension_numbers = #tpu.dot_dimension_numbers<[1], [0], [0], [1], [0, 0, 1, 1], [], []>} : vector<64x128xbf16>, vector<128x384xbf16>, vector<64x384xf32> -> vector<64x384xf32>
        %124 = vector.extract_strided_slice %121 {offsets = [0, 0], sizes = [64, 128], strides = [1, 1]} : vector<320x128xf32> to vector<64x128xf32>
        %125 = vector.extract_strided_slice %121 {offsets = [64, 0], sizes = [64, 128], strides = [1, 1]} : vector<320x128xf32> to vector<64x128xf32>
        %126 = vector.extract_strided_slice %121 {offsets = [128, 0], sizes = [64, 128], strides = [1, 1]} : vector<320x128xf32> to vector<64x128xf32>
        %127 = vector.extract_strided_slice %121 {offsets = [192, 0], sizes = [64, 128], strides = [1, 1]} : vector<320x128xf32> to vector<64x128xf32>
        %128 = vector.extract_strided_slice %121 {offsets = [256, 0], sizes = [64, 128], strides = [1, 1]} : vector<320x128xf32> to vector<64x128xf32>
        %129 = vector.extract_strided_slice %123 {offsets = [0, 0], sizes = [64, 128], strides = [1, 1]} : vector<64x384xf32> to vector<64x128xf32>
        %130 = vector.extract_strided_slice %123 {offsets = [0, 128], sizes = [64, 128], strides = [1, 1]} : vector<64x384xf32> to vector<64x128xf32>
        %131 = vector.extract_strided_slice %123 {offsets = [0, 256], sizes = [64, 128], strides = [1, 1]} : vector<64x384xf32> to vector<64x128xf32>
        %132 = arith.subf %124, %129 : vector<64x128xf32>
        %133 = arith.subf %125, %130 : vector<64x128xf32>
        %134 = vector.broadcast %18 : f32 to vector<64x128xf32>
        %135 = arith.mulf %134, %133 : vector<64x128xf32>
        %136 = arith.addf %132, %135 : vector<64x128xf32>
        %c64_i32_56 = arith.constant 64 : i32
        %137 = tpu.dynamic_rotate %136 by %c64_i32_56 dim 1 : vector<64x128xf32>, i32 -> vector<64x128xf32>
        %c0_57 = arith.constant 0 : index
        %c0_58 = arith.constant 0 : index
        %138 = vector.load %arg7[%c0_57, %c0_58] : memref<64x128xf32, #tpu.memory_space<vmem>>, vector<64x128xf32>
        %139 = arith.mulf %137, %138 : vector<64x128xf32>
        %140 = tpu.concatenate %126, %127 in 1 : vector<64x128xf32>, vector<64x128xf32> -> vector<64x256xf32>
        %141 = arith.truncf %140 : vector<64x256xf32> to vector<64x256xbf16>
        %c0_59 = arith.constant 0 : index
        %c0_60 = arith.constant 0 : index
        %142 = vector.load %arg4[%c0_59, %c0_60] : memref<256x128xbf16, #tpu.memory_space<vmem>>, vector<256x128xbf16>
        %cst_61 = arith.constant dense<0.000000e+00> : vector<64x128xf32>
        %143 = tpu.matmul %141, %142, %cst_61 {dimension_numbers = #tpu.dot_dimension_numbers<[1], [0], [0], [1], [0, 0, 1, 1], [], []>} : vector<64x256xbf16>, vector<256x128xbf16>, vector<64x128xf32> -> vector<64x128xf32>
        %144 = arith.addf %139, %143 : vector<64x128xf32>
        %145 = arith.addf %128, %131 : vector<64x128xf32>
        %146 = arith.addf %144, %145 : vector<64x128xf32>
        %147 = arith.addf %115, %146 : vector<64x128xf32>
        %cst_62 = arith.constant 0.0119047621 : f32
        %148 = vector.broadcast %cst_62 : f32 to vector<64x128xf32>
        %149 = arith.mulf %148, %147 : vector<64x128xf32>
        %150 = arith.addf %19, %149 : vector<64x128xf32>
        %c0_63 = arith.constant 0 : index
        %c0_64 = arith.constant 0 : index
        %151 = vector.load %arg6[%c0_63, %c0_64] : memref<64x128xf32, #tpu.memory_space<vmem>>, vector<64x128xf32>
        tpu.vector_store %arg6[%c0_63, %c0_64], %150 {strides = array<i32>} : memref<64x128xf32, #tpu.memory_space<vmem>>, vector<64x128xf32>,
      } else {
      }
    }
    %c8_i32_2 = arith.constant 8 : i32
    return
  }
  func.func @transform_0(%arg0: i32) -> i32 {
    %c0_i32 = arith.constant 0 : i32
    %c0_i32_0 = arith.constant 0 : i32
    return %c0_i32 : i32
  }
  func.func @transform_1(%arg0: i32) -> (i32, i32) {
    %c0_i32 = arith.constant 0 : i32
    %c0_i32_0 = arith.constant 0 : i32
    %c0_i32_1 = arith.constant 0 : i32
    return %c0_i32, %c0_i32_0 : i32, i32
  }
  func.func @transform_2(%arg0: i32) -> (i32, i32) {
    %c0_i32 = arith.constant 0 : i32
    %c0_i32_0 = arith.constant 0 : i32
    %c0_i32_1 = arith.constant 0 : i32
    return %c0_i32, %c0_i32_0 : i32, i32
  }
  func.func @transform_3(%arg0: i32) -> (i32, i32) {
    %c0_i32 = arith.constant 0 : i32
    %c0_i32_0 = arith.constant 0 : i32
    %c0_i32_1 = arith.constant 0 : i32
    return %c0_i32, %c0_i32_0 : i32, i32
  }
  func.func @transform_4(%arg0: i32) -> (i32, i32, i32) {
    %c0_i32 = arith.constant 0 : i32
    %c0_i32_0 = arith.constant 0 : i32
    %c0_i32_1 = arith.constant 0 : i32
    return %arg0, %c0_i32, %c0_i32_0 : i32, i32, i32
  }
}

</mosaic_0001>

<bundles_post_ra>
// kernel: tpu_custom_call.1
= control target key start
LH: loop header
LB: loop body
LE: loop exit
PB: predicated region body
PF: predicated region fallthrough
CT: control target
= control target key end

     0   :  { %9 = vsyncpa [#allocation7], 0  ;;  %s4029_s0 = inlined_call_operand.vmem [shape: f32[8], index: 0, kind: input, shape index: {}]   ;;  %s4030_s1 = inlined_call_operand.vmem [shape: bf16[320,64], index: 1, kind: input, shape index: {}]   ;;  %s4031_s2 = inlined_call_operand.vmem [shape: bf16[128,384], index: 2, kind: input, shape index: {}]   ;;  %s4032_s3 = inlined_call_operand.hbm [shape: bf16[256,128], index: 3, kind: input, shape index: {}]   ;;  %s4033_s4 = inlined_call_operand.hbm [shape: f32[8,64,128], index: 4, kind: output, shape index: {}]  }
   0x1   :  { %10 = vsyncpa [#allocation5], 0 }
   0x2   :  { %11 = vsyncpa [#allocation6], 0  ;;  %s17_s17 = sshll.u32 %s4029_s0, 4  ;;  %s29_s20 = sshll.u32 %s4032_s3, 4  ;;  %s18_s17 = int_to_ptr.vmem [resolvable:$true] %s17_s17  ;;  %s30_s20 = int_to_ptr.hbm [resolvable:$true] %s29_s20 }
   0x3   :  { %s2717_s21 = smov [#allocation4]   ;;  %s2718_s22 = smov [#allocation8]  }
   0x4   :  { %20 = dma.vmem_to_smem %s18_s17, 16, %s2717_s21, [#allocation7]  }
   0x5   :  { %s31_s23 = sshll.u32 %s2718_s22, 4  ;;  %s2719_s24 = smov 64   ;;  %s32_s23 = int_to_ptr.vmem [resolvable:$true] %s31_s23 }
   0x6   :  { %s2720_s25 = smov 4  }
   0x7   :  { %37 = dma.hbm_to_vmem [thread:$0]  %s30_s20, 2048, %s32_s23, [#allocation5], %s2719_s24, %s2719_s24, %s2720_s25  }
   0x8   :  { %2707 = dma.done.wait [#allocation7], 16  }
   0x9   :  { %2708 = vsyncadd [#allocation7], 4294967280 }
   0xa   :  { %2709 = dma.done.wait [#allocation5], 2048  }
   0xb   :  { %2710 = vsyncadd [#allocation5], 4294965248 }
   0xc   :  { %46 = sfence }
   0xd   :  { %v52_v0 = vlaneseq  ;;  %v2721_v1 = vmov 0.0   ;;  %v2722_v5 = vmov -1.0   ;;  %s2758_s0 = smov 0  }
   0xe   :  { %89 = vst [vmem:[#allocation2] sm:$0xff] %v2721_v1 }
   0xf   :  { %v53_v2 = vshrl.u32 %v52_v0, 7  ;;  %v62_v3 = vand.u32 127, %v52_v0  ;;  %90 = vst [vmem:[#allocation2 + $0x18] sm:$0xff] %v2721_v1 }
  0x10   :  { %91 = vst [vmem:[#allocation2 + $0x10] sm:$0xff] %v2721_v1 }
  0x11   :  { %vm63_vm0 = vcmp.eq.s32.totalorder %v53_v2, 0  ;;  %vm71_vm1 = vcmp.eq.s32.totalorder %v62_v3, 0  ;;  %vm96_vm2 = vcmp.lt.s32.totalorder %v62_v3, 64  ;;  %92 = vst [vmem:[#allocation2 + $0x8] sm:$0xff] %v2721_v1 }
  0x12   :  { %vm72_vm3 = vmand %vm63_vm0, %vm71_vm1  ;;  %93 = vst [vmem:[#allocation2 + $0x20] sm:$0xff] %v2721_v1  ;;  %v97_v6 = vsel %vm96_vm2, 1.0, %v2722_v5 }
  0x13   :  { %v80_v4 = vsel %vm72_vm3, 1.0, %v2721_v1  ;;  %94 = vst [vmem:[#allocation2 + $0x28] sm:$0xff] %v2721_v1 }
  0x14   :  { %88 = vst [vmem:[#allocation2 + $0x30] sm:$0xff] %v80_v4 }
  0x15   :  { %95 = vst [vmem:[#allocation2 + $0x38] sm:$0xff] %v2721_v1 }
  0x16   :  { %98 = vst [vmem:[#allocation3] sm:$0xff] %v97_v6 }
  0x17   :  { %99 = vst [vmem:[#allocation3 + $0x18] sm:$0xff] %v97_v6 }
  0x18   :  { %100 = vst [vmem:[#allocation3 + $0x10] sm:$0xff] %v97_v6 }
  0x19   :  { %101 = vst [vmem:[#allocation3 + $0x20] sm:$0xff] %v97_v6 }
  0x1a   :  { %102 = vst [vmem:[#allocation3 + $0x28] sm:$0xff] %v97_v6 }
  0x1b   :  { %103 = vst [vmem:[#allocation3 + $0x8] sm:$0xff] %v97_v6 }
  0x1c   :  { %104 = vst [vmem:[#allocation3 + $0x30] sm:$0xff] %v97_v6 }
  0x1d   :  { %105 = vst [vmem:[#allocation3 + $0x38] sm:$0xff] %v97_v6 }
  0x1e LB: > { %v112_v7 = vld [vmem:[#allocation2 + $0x30] sm:$0xff]  ;;  %s2169_s3 = sshll.u32 %s2715_s0, 6  ;;  %v113_v8 = vld [vmem:[#allocation2] sm:$0xff]  ;;  %v114_v9 = vld [vmem:[#allocation2 + $0x18] sm:$0xff]  ;;  %p2170_p0 = scmp.ge.s32.totalorder %s2715_s0, 7  ;;  %s2715_s0 = sphi %s2758_s0, %s111_s0  }
  0x1f   : > { %s121_s26 = scalar_lea.vmem [#allocation9], %s2169_s3  ;;  %v115_v10 = vld [vmem:[#allocation2 + $0x10] sm:$0xff]  ;;  %v116_v11 = vld [vmem:[#allocation2 + $0x8] sm:$0xff]  ;;  %v117_v12 = vld [vmem:[#allocation2 + $0x20] sm:$0xff] }
  0x20   : > { %122 = vst [vmem:[%s121_s26] sm:$0xff] %v112_v7  ;;  %v118_v13 = vld [vmem:[#allocation2 + $0x28] sm:$0xff]  ;;  %v119_v14 = vld [vmem:[#allocation2 + $0x38] sm:$0xff] }
  0x21   : > { %123 = vst [vmem:[%s121_s26 + $0x8] sm:$0xff] %v113_v8 }
  0x22   : > { %124 = vst [vmem:[%s121_s26 + $0x10] sm:$0xff] %v114_v9 }
  0x23   : > { %125 = vst [vmem:[%s121_s26 + $0x18] sm:$0xff] %v115_v10  ;;  %135 = sbr.rel (%p2170_p0) target bundleno = 2216 (0x8a8), region = 40 }
  0x24   : > { %126 = vst [vmem:[%s121_s26 + $0x20] sm:$0xff] %v116_v11 }
  0x25   : > { %127 = vst [vmem:[%s121_s26 + $0x28] sm:$0xff] %v117_v12 }
  0x26   : > { %128 = vst [vmem:[%s121_s26 + $0x30] sm:$0xff] %v118_v13 }
  0x27   : > { %129 = vst [vmem:[%s121_s26 + $0x38] sm:$0xff] %v119_v14 }
  0x28   : > { %v2765_v15 = vld [vmem:[#allocation2 + $0x28] sm:$0xff]  ;;  %v2767_v16 = vld [vmem:[#allocation2 + $0x38] sm:$0xff]  ;;  %v2533_v19 = vld [vmem:[%s4031_s2 + $0xb0] sm:$0xf0]  ;;  %vm291_vm4 = vcmask 523264   ;;  %s136_s28 = sld [smem:[#allocation4 + %s2715_s0]] }
  0x29   : > { %4081 = vst [vmem:[#allocation13_spill] sm:$0xff] %v2765_v15  ;;  %v2357_v17 = vld [vmem:[%s4031_s2 + $0xa8] sm:$0xf]  ;;  %v2774_v18 = vpack.c.bf16 %v2767_v16, %v2765_v15  ;;  %v2781_v21 = vld [vmem:[#allocation2 + $0x20] sm:$0xff]  ;;  %v2345_v23 = vld [vmem:[%s4031_s2 + $0x90] sm:$0xf] }
  0x2a   : > { %4082 = vst [vmem:[#allocation14_spill] sm:$0xff] %v2767_v16  ;;  %v2779_v20 = vld [vmem:[#allocation2 + $0x8] sm:$0xff]  ;;  %v2783_v22 = vor.u32 %v2533_v19, %v2357_v17  ;;  %v2530_v24 = vld [vmem:[%s4031_s2 + $0x98] sm:$0xf0]  ;;  %v2802_v28 = vld [vmem:[#allocation2 + $0x10] sm:$0xff]  ;;  %s2723_s29 = smov 64  }
  0x2b   : > { %4083 = vst [vmem:[#allocation15_spill] sm:$0xff] %v2779_v20  ;;  %356 = vmatpush.bf16.msra.mxu0 %v2774_v18  ;;  %2551 = vmatpush.bf16.msra.mxu2 %v2774_v18  ;;  %v2795_v25 = vpack.c.bf16 %v2781_v21, %v2779_v20  ;;  %v2798_v26 = vor.u32 %v2530_v24, %v2345_v23  ;;  %v2800_v27 = vld [vmem:[#allocation2 + $0x18] sm:$0xff]  ;;  %v2527_v30 = vld [vmem:[%s4031_s2 + $0x80] sm:$0xf0]  ;;  %v2819_v33 = vld [vmem:[#allocation2 + $0x30] sm:$0xff]  ;;  %s137_s30 = sadd.s32 1, %s2715_s0 }
  0x2c   : > { %4084 = vst [vmem:[#allocation16_spill] sm:$0xff] %v2781_v21  ;;  %621 = vmatpush.bf16.msra.mxu1 %v2783_v22  ;;  %v2333_v29 = vld [vmem:[%s4031_s2 + $0x78] sm:$0xf]  ;;  %v2814_v31 = vpack.c.bf16 %v2802_v28, %v2800_v27  ;;  %v2821_v34 = vld [vmem:[#allocation2] sm:$0xff]  ;;  %v2524_v36 = vld [vmem:[%s4031_s2 + $0x68] sm:$0xf0] }
  0x2d   : > { %4085 = vst [vmem:[#allocation17_spill] sm:$0xff] %v2783_v22  ;;  %v2817_v32 = vor.u32 %v2527_v30, %v2333_v29  ;;  %v2321_v35 = vld [vmem:[%s4031_s2 + $0x60] sm:$0xf]  ;;  %v2833_v37 = vpack.c.bf16 %v2821_v34, %v2819_v33  ;;  %v2309_v39 = vld [vmem:[%s4031_s2 + $0x48] sm:$0xf]  ;;  %v2899_v54 = vld [vmem:[%s4030_s1 + $0x70] sm:$0xff] }
  0x2e   : > { %4086 = vst [vmem:[#allocation18_spill] sm:$0xff] %v2798_v26  ;;  %v2836_v38 = vor.u32 %v2524_v36, %v2321_v35  ;;  %v2521_v40 = vld [vmem:[%s4031_s2 + $0x50] sm:$0xf0]  ;;  %v2847_v41 = vld [vmem:[%s4030_s1] sm:$0xff]  ;;  %v2504_v42 = vld [vmem:[%s4030_s1 + $0x68] sm:$0xff]  ;;  %s138_s5 = sld [smem:[#allocation4 + %s137_s30]] }
  0x2f   : > { %4087 = vst [vmem:[#allocation19_spill] sm:$0xff] %v2800_v27  ;;  %357 = vmatpush.bf16.msra.mxu0 %v2795_v25  ;;  %2552 = vmatpush.bf16.msra.mxu2 %v2795_v25  ;;  %v2855_v43 = vor.u32 %v2521_v40, %v2309_v39  ;;  %v2297_v44 = vld [vmem:[%s4031_s2 + $0x30] sm:$0xf]  ;;  %v2518_v45 = vld [vmem:[%s4031_s2 + $0x38] sm:$0xf0]  ;;  %v2894_v53 = vld [vmem:[%s4030_s1 + $0x8] sm:$0xff]  ;;  %v3269_v27 = vstv %s136_s28 }
  0x30   : > { %4088 = vst [vmem:[#allocation20_spill] sm:$0xff] %v2802_v28  ;;  %622 = vmatpush.bf16.msra.mxu1 %v2798_v26  ;;  %v2868_v46 = vor.u32 %v2518_v45, %v2297_v44  ;;  %v2285_v47 = vld [vmem:[%s4031_s2 + $0x18] sm:$0xf]  ;;  %v2515_v48 = vld [vmem:[%s4031_s2 + $0x20] sm:$0xf0]  ;;  %v2914_v55 = vld [vmem:[%s4030_s1 + $0x10] sm:$0xff] }
  0x31   : > { %4089 = vst [vmem:[#allocation21_spill] sm:$0xff] %v2817_v32  ;;  %v2878_v49 = vor.u32 %v2515_v48, %v2285_v47  ;;  %v2273_v50 = vld [vmem:[%s4031_s2] sm:$0xf]  ;;  %v2512_v51 = vld [vmem:[%s4031_s2 + $0x8] sm:$0xf0]  ;;  %v2919_v56 = vld [vmem:[%s4030_s1 + $0x78] sm:$0xff] }
  0x32   : > { %4090 = vst [vmem:[#allocation22_spill] sm:$0xff] %v2819_v33  ;;  %v2888_v52 = vor.u32 %v2512_v51, %v2273_v50  ;;  %v2929_v57 = vld [vmem:[%s4030_s1 + $0x18] sm:$0xff]  ;;  %v2507_v58 = vld [vmem:[%s4030_s1 + $0x80] sm:$0xff]  ;;  %v2532_v59 = vld [vmem:[%s4031_s2 + $0xac] sm:$0xf] }
  0x33   : > { %4091 = vst [vmem:[#allocation23_spill] sm:$0xff] %v2821_v34  ;;  %358 = vmatpush.bf16.msra.mxu0 %v2814_v31  ;;  %2553 = vmatpush.bf16.msra.mxu2 %v2814_v31  ;;  %v2359_v60 = vld [vmem:[%s4031_s2 + $0xb4] sm:$0xf0]  ;;  %v2529_v62 = vld [vmem:[%s4031_s2 + $0x94] sm:$0xf]  ;;  %v2976_v7 = vld [vmem:[%s4030_s1 + $0x20] sm:$0xff] }
  0x34   : > { %623 = vmatpush.bf16.msra.mxu1 %v2817_v32  ;;  %4092 = vst [vmem:[#allocation24_spill] sm:$0xff] %v2836_v38  ;;  %v2943_v61 = vor.u32 %v2532_v59, %v2359_v60  ;;  %v2347_v63 = vld [vmem:[%s4031_s2 + $0x9c] sm:$0xf0]  ;;  %v2526_v1 = vld [vmem:[%s4031_s2 + $0x7c] sm:$0xf]  ;;  %v2981_v8 = vld [vmem:[%s4030_s1 + $0x88] sm:$0xff] }
  0x35   : > { %4093 = vst [vmem:[#allocation25_spill] sm:$0xff] %v2847_v41  ;;  %v2953_v0 = vor.u32 %v2529_v62, %v2347_v63  ;;  %v2335_v2 = vld [vmem:[%s4031_s2 + $0x84] sm:$0xf0]  ;;  %v2523_v4 = vld [vmem:[%s4031_s2 + $0x64] sm:$0xf]  ;;  %v3052_v47 = vld [vmem:[%s4030_s1 + $0x90] sm:$0xff] }
  0x36   : > { %4094 = vst [vmem:[#allocation26_spill] sm:$0xff] %v2855_v43  ;;  %v2962_v3 = vor.u32 %v2526_v1, %v2335_v2  ;;  %v2323_v5 = vld [vmem:[%s4031_s2 + $0x6c] sm:$0xf0]  ;;  %v2520_v9 = vld [vmem:[%s4031_s2 + $0x4c] sm:$0xf]  ;;  %v3254_v21 = vld [vmem:[#allocation8] sm:$0xff] }
  0x37   : > { %359 = vmatpush.bf16.msra.mxu0 %v2833_v37  ;;  %2554 = vmatpush.bf16.msra.mxu2 %v2833_v37  ;;  %4095 = vst [vmem:[#allocation27_spill] sm:$0xff] %v2878_v49  ;;  %v2971_v6 = vor.u32 %v2523_v4, %v2323_v5  ;;  %v2311_v10 = vld [vmem:[%s4031_s2 + $0x54] sm:$0xf0]  ;;  %v2517_v12 = vld [vmem:[%s4031_s2 + $0x34] sm:$0xf]  ;;  %v3047_v45 = vld [vmem:[%s4030_s1 + $0x28] sm:$0xff] }
  0x38   : > { %624 = vmatpush.bf16.msra.mxu1 %v2836_v38  ;;  %4096 = vst [vmem:[#allocation28_spill] sm:$0xff] %v2888_v52  ;;  %v2994_v11 = vor.u32 %v2520_v9, %v2311_v10  ;;  %v2299_v13 = vld [vmem:[%s4031_s2 + $0x3c] sm:$0xf0]  ;;  %v2365_v14 = vld [vmem:[%s4031_s2 + $0xb0] sm:$0xf]  ;;  %v3105_v10 = vld [vmem:[%s4030_s1 + $0x98] sm:$0xff] }
  0x39   : > { %4097 = vst [vmem:[#allocation29_spill] sm:$0xff] %v2894_v53  ;;  %v2534_v17 = vld [vmem:[%s4031_s2 + $0xb8] sm:$0xf0]  ;;  %v3010_v19 = vor.u32 %v2517_v12, %v2299_v13  ;;  %v2353_v24 = vld [vmem:[%s4031_s2 + $0x98] sm:$0xf]  ;;  %v3100_v9 = vld [vmem:[%s4030_s1 + $0x30] sm:$0xff] }
  0x3a   : > { %2251 = vmatmul.msk.bf16.vlgmr.msra.gmra.mxu0 %vm291_vm4, %v2847_v41  ;;  %2264 = vmatmul.msk.bf16.vlgmr.msra.gmra.mxu2 %vm291_vm4, %v2504_v42  ;;  %4098 = vst [vmem:[#allocation30_spill] sm:$0xff] %v2899_v54  ;;  %v3012_v23 = vor.u32 %v2534_v17, %v2365_v14  ;;  %v2531_v29 = vld [vmem:[%s4031_s2 + $0xa0] sm:$0xf0]  ;;  %v2514_v30 = vld [vmem:[%s4031_s2 + $0x1c] sm:$0xf]  ;;  %v3249_v16 = vld [vmem:[#allocation8 + $0x8] sm:$0xff] }
  0x3b   : > { %1499 = vmatpush.bf16.msrb.mxu0 %v2783_v22  ;;  %4099 = vst [vmem:[#allocation31_spill] sm:$0xff] %v2914_v55  ;;  %650 = vmatpush.bf16.msrb.mxu2 %v2943_v61  ;;  %v2287_v35 = vld [vmem:[%s4031_s2 + $0x24] sm:$0xf0]  ;;  %v3027_v36 = vor.u32 %v2531_v29, %v2353_v24  ;;  %v2511_v40 = vld [vmem:[%s4031_s2 + $0x4] sm:$0xf] }
  0x3c   : > { %625 = vmatpush.bf16.msra.mxu1 %v2855_v43  ;;  %4100 = vst [vmem:[#allocation32_spill] sm:$0xff] %v2919_v56  ;;  %679 = vmatpush.bf16.msra.mxu3 %v3012_v23  ;;  %v3031_v39 = vor.u32 %v2514_v30, %v2287_v35  ;;  %v2275_v42 = vld [vmem:[%s4031_s2 + $0xc] sm:$0xf0]  ;;  %v2341_v48 = vld [vmem:[%s4031_s2 + $0x80] sm:$0xf]  ;;  %v3137_v30 = vld [vmem:[%s4030_s1 + $0x38] sm:$0xff] }
  0x3d   : > { %4101 = vst [vmem:[#allocation33_spill] sm:$0xff] %v2929_v57  ;;  %v3042_v44 = vor.u32 %v2511_v40, %v2275_v42  ;;  %v2528_v50 = vld [vmem:[%s4031_s2 + $0x88] sm:$0xf0]  ;;  %v2525_v59 = vld [vmem:[%s4031_s2 + $0x70] sm:$0xf0]  ;;  %v3146_v35 = vld [vmem:[%s4030_s1 + $0x40] sm:$0xff] }
  0x3e   : > { %4102 = vst [vmem:[#allocation34_spill] sm:$0xff] %v2976_v7  ;;  %v3061_v51 = vor.u32 %v2528_v50, %v2341_v48  ;;  %v2317_v62 = vld [vmem:[%s4031_s2 + $0x50] sm:$0xf]  ;;  %v2522_v63 = vld [vmem:[%s4031_s2 + $0x58] sm:$0xf0]  ;;  %v3163_v50 = vld [vmem:[%s4030_s1 + $0x48] sm:$0xff] }
  0x3f   : > { %1500 = vmatpush.bf16.msrb.mxu0 %v2798_v26  ;;  %651 = vmatpush.bf16.msrb.mxu2 %v2953_v0  ;;  %4103 = vst [vmem:[#allocation35_spill] sm:$0xff] %v2981_v8  ;;  %v3084_v1 = vor.u32 %v2522_v63, %v2317_v62  ;;  %v2305_v2 = vld [vmem:[%s4031_s2 + $0x38] sm:$0xf]  ;;  %v2519_v4 = vld [vmem:[%s4031_s2 + $0x40] sm:$0xf0] }
  0x40   : > { %626 = vmatpush.bf16.msra.mxu1 %v2868_v46  ;;  %680 = vmatpush.bf16.msra.mxu3 %v3027_v36  ;;  %4104 = vst [vmem:[#allocation36_spill] sm:$0xff] %v3047_v45  ;;  %v3094_v5 = vor.u32 %v2519_v4, %v2305_v2  ;;  %v2293_v12 = vld [vmem:[%s4031_s2 + $0x20] sm:$0xf]  ;;  %v2516_v13 = vld [vmem:[%s4031_s2 + $0x28] sm:$0xf0]  ;;  %v3184_v4 = vld [vmem:[%s4030_s1 + $0x50] sm:$0xff] }
  0x41   : > { %4105 = vst [vmem:[#allocation37_spill] sm:$0xff] %v3052_v47  ;;  %v3115_v14 = vor.u32 %v2516_v13, %v2293_v12  ;;  %v2281_v17 = vld [vmem:[%s4031_s2 + $0x8] sm:$0xf]  ;;  %v2513_v24 = vld [vmem:[%s4031_s2 + $0x10] sm:$0xf0] }
  0x42   : > { %4106 = vst [vmem:[#allocation38_spill] sm:$0xff] %v3100_v9  ;;  %v3129_v29 = vor.u32 %v2513_v24, %v2281_v17  ;;  %v3200_v24 = vld [vmem:[%s4030_s1 + $0x58] sm:$0xff] }
  0x43   : > { %1501 = vmatpush.bf16.msrb.mxu0 %v2817_v32  ;;  %652 = vmatpush.bf16.msrb.mxu2 %v2962_v3  ;;  %4107 = vst [vmem:[#allocation39_spill] sm:$0xff] %v3105_v10 }
  0x44   : > { %627 = vmatpush.bf16.msra.mxu1 %v2878_v49  ;;  %681 = vmatpush.bf16.msra.mxu3 %v3061_v51  ;;  %4108 = vst [vmem:[#allocation40_spill] sm:$0xff] %v3129_v29 }
  0x45   : > { %4109 = vst [vmem:[#allocation41_spill] sm:$0xff] %v3137_v30 }
  0x46   : > { %4110 = vst [vmem:[#allocation42_spill] sm:$0xff] %v3146_v35 }
  0x47   : > { %1502 = vmatpush.bf16.msrb.mxu0 %v2836_v38  ;;  %653 = vmatpush.bf16.msrb.mxu2 %v2971_v6  ;;  %4111 = vst [vmem:[#allocation43_spill] sm:$0xff] %v3163_v50 }
  0x48   : > { %628 = vmatpush.bf16.msra.mxu1 %v2888_v52  ;;  %4112 = vst [vmem:[#allocation44_spill] sm:$0xff] %v3184_v4 }
  0x49   : > { %4113 = vst [vmem:[#allocation45_spill] sm:$0xff] %v3200_v24 }
  0x4a   : > { %2252 = vmatmul.msk.bf16.gmra.mxu0 %vm291_vm4, %v2894_v53  ;;  %2265 = vmatmul.msk.bf16.gmra.mxu2 %vm291_vm4, %v2899_v54  ;;  %v3244_v53 = vld [vmem:[#allocation8 + $0x10] sm:$0xff] }
  0x4b   : > { %1503 = vmatpush.bf16.msrb.mxu0 %v2855_v43  ;;  %629 = vmatmul.bf16.vlgmr.msra.gmra.mxu1 %v2833_v37 }
  0x4c   : > { %654 = vmatpush.bf16.msrb.mxu2 %v2994_v11 }
  0x4f   : > { %1504 = vmatpush.bf16.msrb.mxu0 %v2868_v46 }
  0x50   : > { %655 = vmatpush.bf16.msrb.mxu2 %v3010_v19 }
  0x53   : > { %1505 = vmatpush.bf16.msrb.mxu0 %v2878_v49 }
  0x54   : > { %656 = vmatpush.bf16.msrb.mxu2 %v3031_v39 }
  0x57   : > { %1506 = vmatpush.bf16.msrb.mxu0 %v2888_v52 }
  0x58   : > { %657 = vmatpush.bf16.msrb.mxu2 %v3042_v44 }
  0x5a   : > { %2253 = vmatmul.msk.bf16.gmra.mxu0 %vm291_vm4, %v2914_v55  ;;  %2266 = vmatmul.msk.bf16.gmra.mxu2 %vm291_vm4, %v2919_v56 }
  0x5b   : > { %634 = vmatmul.bf16.gmra.mxu1 %v2814_v31  ;;  %1557 = vmatpush.bf16.msra.mxu0 %v3012_v23 }
  0x5f   : > { %1558 = vmatpush.bf16.msra.mxu0 %v3027_v36 }
  0x63   : > { %1559 = vmatpush.bf16.msra.mxu0 %v3061_v51 }
  0x6a   : > { %2254 = vmatmul.msk.bf16.gmra.mxu0 %vm291_vm4, %v2929_v57  ;;  %2267 = vmatmul.msk.bf16.gmra.mxu2 %vm291_vm4, %v2507_v58  ;;  %v2329_v58 = vld [vmem:[%s4031_s2 + $0x68] sm:$0xf]  ;;  %v3239_v57 = vld [vmem:[#allocation8 + $0x18] sm:$0xff] }
  0x6b   : > { %639 = vmatmul.bf16.gmra.mxu1 %v2795_v25  ;;  %v3074_v60 = vor.u32 %v2525_v59, %v2329_v58 }
  0x6d   : > { %682 = vmatpush.bf16.msra.mxu3 %v3074_v60  ;;  %1560 = vmatpush.bf16.msra.mxu0 %v3074_v60 }
  0x71   : > { %683 = vmatpush.bf16.msra.mxu3 %v3084_v1  ;;  %1561 = vmatpush.bf16.msra.mxu0 %v3084_v1 }
  0x75   : > { %684 = vmatpush.bf16.msra.mxu3 %v3094_v5  ;;  %1562 = vmatpush.bf16.msra.mxu0 %v3094_v5 }
  0x79   : > { %685 = vmatpush.bf16.msra.mxu3 %v3115_v14  ;;  %1563 = vmatpush.bf16.msra.mxu0 %v3115_v14 }
  0x7a   : > { %2255 = vmatmul.msk.bf16.gmra.mxu0 %vm291_vm4, %v2976_v7  ;;  %2268 = vmatmul.msk.bf16.gmra.mxu2 %vm291_vm4, %v2981_v8  ;;  %v3215_v8 = vld [vmem:[%s4030_s1 + $0x60] sm:$0xff] }
  0x7b   : > { %644 = vmatmul.bf16.gmra.mxu1 %v2774_v18  ;;  %4114 = vst [vmem:[#allocation46_spill] sm:$0xff] %v3215_v8 }
  0x7d   : > { %686 = vmatpush.bf16.msra.mxu3 %v3129_v29  ;;  %1564 = vmatpush.bf16.msra.mxu0 %v3129_v29 }
  0x80   : > { %687 = vmatmul.bf16.vlgmr.msra.gmra.mxu3 %v2833_v37 }
  0x8a   : > { %2256 = vmatmul.msk.bf16.gmra.mxu0 %vm291_vm4, %v3047_v45  ;;  %2269 = vmatmul.msk.bf16.gmra.mxu2 %vm291_vm4, %v3052_v47  ;;  %v3236_v45 = vld [vmem:[#allocation8 + $0x20] sm:$0xff] }
  0x90   : > { %692 = vmatmul.bf16.gmra.mxu3 %v2814_v31 }
  0x9a   : > { %2257 = vmatmul.msk.bf16.gmra.mxu0 %vm291_vm4, %v3100_v9  ;;  %2270 = vmatmul.msk.bf16.gmra.mxu2 %vm291_vm4, %v3105_v10  ;;  %v3231_v9 = vld [vmem:[#allocation8 + $0x28] sm:$0xff] }
  0xa0   : > { %697 = vmatmul.bf16.gmra.mxu3 %v2795_v25 }
  0xaa   : > { %2258 = vmatmul.msk.bf16.gmra.mxu0 %vm291_vm4, %v3137_v30  ;;  %658 = vmatmul.bf16.vlgmr.msrb.gmra.mxu2 %v2833_v37 }
  0xb0   : > { %702 = vmatmul.bf16.gmra.mxu3 %v2774_v18 }
  0xb7   : > { %v3148_v40 = vpop.f32.mrf.mxu0 }
  0xba   : > { %2259 = vmatmul.msk.bf16.gmra.mxu0 %vm291_vm4, %v3146_v35  ;;  %663 = vmatmul.bf16.gmra.mxu2 %v2814_v31  ;;  %v3228_v35 = vld [vmem:[#allocation8 + $0x30] sm:$0xff] }
  0xbd   : > { %v3153_v42 = vpop.f32.mrf.mxu2 }
  0xbf   : > { %v3155_v48 = vpop.f32.mrf.mxu0 }
  0xc5   : > { %v3158_v37 = vpop.f32.mrf.mxu2 }
  0xc7   : > { %v3165_v58 = vpop.f32.mrf.mxu0 }
  0xc8   : > { %v3167_v59 = vpop.f32.mrf.mxu1 }
  0xca   : > { %2260 = vmatmul.msk.bf16.gmra.mxu0 %vm291_vm4, %v3163_v50  ;;  %668 = vmatmul.bf16.gmra.mxu2 %v2795_v25 }
  0xcd   : > { %v3174_v62 = vpop.f32.mrf.mxu2 }
  0xcf   : > { %v3176_v63 = vpop.f32.mrf.mxu0 }
  0xd0   : > { %v3266_v28 = vpop.f32.mrf.mxu1 }
  0xd5   : > { %v3179_v2 = vpop.f32.mrf.mxu2 }
  0xd7   : > { %v3186_v12 = vpop.f32.mrf.mxu0 }
  0xd8   : > { %v635_v34 = vpop.f32.mrf.mxu1 }
  0xda   : > { %2261 = vmatmul.msk.bf16.gmra.mxu0 %vm291_vm4, %v3184_v4  ;;  %673 = vmatmul.bf16.gmra.mxu2 %v2774_v18 }
  0xdd   : > { %v3191_v25 = vpop.f32.mrf.mxu2 }
  0xdf   : > { %v3193_v13 = vpop.f32.mrf.mxu0 }
  0xe5   : > { %v3195_v17 = vpop.f32.mrf.mxu2 }
  0xe7   : > { %v3202_v31 = vpop.f32.mrf.mxu0 }
  0xea   : > { %2262 = vmatmul.msk.bf16.gmra.mxu0 %vm291_vm4, %v3200_v24  ;;  %v3223_v24 = vld [vmem:[#allocation8 + $0x38] sm:$0xff] }
  0xeb   : > { %909 = vmatpush.bf16.msrb.mxu1 %v3223_v24 }
  0xed   : > { %v3206_v10 = vpop.f32.mrf.mxu2 }
  0xef   : > { %v3208_v47 = vpop.f32.mrf.mxu0  ;;  %910 = vmatpush.bf16.msrb.mxu1 %v3228_v35 }
  0xf3   : > { %911 = vmatpush.bf16.msrb.mxu1 %v3231_v9 }
  0xf5   : > { %v3210_v18 = vpop.f32.mrf.mxu2 }
  0xf7   : > { %v381_v56 = vpop.f32.mrf.mxu0  ;;  %912 = vmatpush.bf16.msrb.mxu1 %v3236_v45 }
  0xfa   : > { %2263 = vmatmul.msk.bf16.gmra.mxu0 %vm291_vm4, %v3215_v8 }
  0xfb   : > { %913 = vmatpush.bf16.msrb.mxu1 %v3239_v57 }
  0xfd   : > { %v3219_v54 = vpop.f32.mrf.mxu2 }
  0xfe   : > { %4115 = vst [vmem:[#allocation47_spill] sm:$0xff] %v3219_v54 }
  0xff   : > { %v3221_v4 = vpop.f32.mrf.mxu0  ;;  %914 = vmatpush.bf16.msrb.mxu1 %v3244_v53 }
 0x103   : > { %915 = vmatpush.bf16.msrb.mxu1 %v3249_v16 }
 0x105   : > { %v3226_v50 = vpop.f32.mrf.mxu2 }
 0x106   : > { %4116 = vst [vmem:[#allocation48_spill] sm:$0xff] %v3226_v50 }
 0x107   : > { %v386_v30 = vpop.f32.mrf.mxu0  ;;  %916 = vmatpush.bf16.msrb.mxu1 %v3254_v21 }
 0x10b   : > { %1120 = vmatpush.bf16.msra.mxu1 %v2783_v22 }
 0x10d   : > { %v3234_v8 = vpop.f32.mrf.mxu2 }
 0x10e   : > { %4117 = vst [vmem:[#allocation49_spill] sm:$0xff] %v3234_v8 }
 0x10f   : > { %v388_v7 = vpop.f32.mrf.mxu0  ;;  %1121 = vmatpush.bf16.msra.mxu1 %v2798_v26  ;;  %v4121_v26 = vsub.f32 %v3148_v40, %v3167_v59  ;;  %v3288_v59 = vld [vmem:[#allocation8 + $0x78] sm:$0xff] }
 0x110   : > { %938 = vmatpush.bf16.msra.mxu2 %v3288_v59 }
 0x113   : > { %1122 = vmatpush.bf16.msra.mxu1 %v2817_v32 }
 0x115   : > { %v3242_v55 = vpop.f32.mrf.mxu2 }
 0x116   : > { %4118 = vst [vmem:[#allocation50_spill] sm:$0xff] %v3242_v55 }
 0x117   : > { %v3246_v41 = vpop.f32.mrf.mxu0  ;;  %1123 = vmatpush.bf16.msra.mxu1 %v2836_v38 }
 0x11b   : > { %1124 = vmatpush.bf16.msra.mxu1 %v2855_v43  ;;  %v710_v43 = vsub.f32 %v3165_v58, %v635_v34 }
 0x11d   : > { %v3252_v15 = vpop.f32.mrf.mxu2 }
 0x11e   : > { %4119 = vst [vmem:[#allocation51_spill] sm:$0xff] %v3252_v15 }
 0x11f   : > { %v3256_v20 = vpop.f32.mrf.mxu0  ;;  %1125 = vmatpush.bf16.msra.mxu1 %v2868_v46 }
 0x123   : > { %1126 = vmatpush.bf16.msra.mxu1 %v2878_v49 }
 0x125   : > { %v3260_v55 = vpop.f32.mrf.mxu2 }
 0x126   : > { %4120 = vst [vmem:[#allocation52_spill] sm:$0xff] %v3260_v55 }
 0x127   : > { %v3264_v8 = vpop.f32.mrf.mxu0  ;;  %1127 = vmatpush.bf16.msra.mxu1 %v2888_v52 }
 0x12d   : > { %v659_v15 = vpop.f32.mrf.mxu2 }
 0x12e   : > { %v716_v50 = vsub.f32 %v381_v56, %v659_v15  ;;  %v637_v15 = vpop.f32.mrf.mxu1 }
 0x12f   : > { %v3272_v54 = vpop.f32.mrf.mxu0 }
 0x130   : > { %v725_v22 = vmul.f32 %v3269_v27, %v716_v50 }
 0x132   : > { %v3279_v55 = vadd.f32 %v725_v22, %v4121_v26 }
 0x135   : > { %v3281_v33 = vpop.f32.mrf.mxu2 }
 0x137   : > { %v401_v32 = vpop.f32.mrf.mxu0 }
 0x13d   : > { %v664_v56 = vpop.f32.mrf.mxu2 }
 0x13e   : > { %v718_v50 = vsub.f32 %v386_v30, %v664_v56  ;;  %v3293_v30 = vld [vmem:[#allocation8 + $0x70] sm:$0xff]  ;;  %v640_v56 = vpop.f32.mrf.mxu1 }
 0x13f   : > { %v403_v38 = vpop.f32.mrf.mxu0  ;;  %939 = vmatpush.bf16.msra.mxu2 %v3293_v30 }
 0x140   : > { %v727_v40 = vmul.f32 %v3269_v27, %v718_v50  ;;  %v773_v22 = vpack.c.bf16 %v403_v38, %v401_v32  ;;  %v711_v32 = vsub.f32 %v3176_v63, %v637_v15  ;;  %v3305_v50 = vld [vmem:[#allocation8 + $0x60] sm:$0xff] }
 0x142   : > { %917 = vmatmul.bf16.vlgmr.msrb.gmra.mxu1 %v773_v22  ;;  %v735_v26 = vadd.f32 %v727_v40, %v710_v43  ;;  %v3299_v43 = vld [vmem:[#allocation8 + $0x68] sm:$0xff] }
 0x143   : > { %1178 = vmatpush.bf16.msrb.mxu1 %v3012_v23  ;;  %940 = vmatpush.bf16.msra.mxu2 %v3299_v43 }
 0x144   : > { %745 = vrot.lane.b32.xlu2 %v735_v26, %s2723_s29 }
 0x145   : > { %v666_v49 = vpop.f32.mrf.mxu2 }
 0x146   : > { %v719_v52 = vsub.f32 %v388_v7, %v666_v49  ;;  %v642_v22 = vpop.f32.mrf.mxu1 }
 0x147   : > { %v406_v34 = vpop.f32.mrf.mxu0  ;;  %1179 = vmatpush.bf16.msrb.mxu1 %v3027_v36  ;;  %941 = vmatpush.bf16.msra.mxu2 %v3305_v50 }
 0x148   : > { %v728_v38 = vmul.f32 %v3269_v27, %v719_v52  ;;  %v712_v52 = vsub.f32 %v3186_v12, %v640_v56  ;;  %v3317_v12 = vld [vmem:[#allocation8 + $0x50] sm:$0xff] }
 0x14a   : > { %v736_v58 = vadd.f32 %v728_v38, %v711_v32  ;;  %v3311_v32 = vld [vmem:[#allocation8 + $0x58] sm:$0xff] }
 0x14b   : > { %1180 = vmatpush.bf16.msrb.mxu1 %v3061_v51  ;;  %942 = vmatpush.bf16.msra.mxu2 %v3311_v32 }
 0x14c   : > { %747 = vrot.lane.b32.xlu2 %v736_v58, %s2723_s29 }
 0x14d   : > { %v669_v49 = vpop.f32.mrf.mxu2 }
 0x14e   : > { %v720_v7 = vsub.f32 %v3246_v41, %v669_v49  ;;  %v3323_v49 = vld [vmem:[#allocation8 + $0x48] sm:$0xff] }
 0x14f   : > { %v408_v40 = vpop.f32.mrf.mxu0  ;;  %1181 = vmatpush.bf16.msrb.mxu1 %v3074_v60  ;;  %943 = vmatpush.bf16.msra.mxu2 %v3317_v12 }
 0x150   : > { %v729_v63 = vmul.f32 %v3269_v27, %v720_v7  ;;  %v775_v15 = vpack.c.bf16 %v408_v40, %v406_v34  ;;  %v713_v34 = vsub.f32 %v3193_v13, %v642_v22  ;;  %v717_v7 = vsub.f32 %v3221_v4, %v3281_v33 }
 0x151   : > { %v709_v33 = vsub.f32 %v3155_v48, %v3266_v28 }
 0x152   : > { %922 = vmatmul.bf16.gmra.mxu1 %v775_v15  ;;  %v737_v26 = vadd.f32 %v729_v63, %v712_v52  ;;  %v645_v52 = vpop.f32.mrf.mxu1  ;;  %v726_v13 = vmul.f32 %v3269_v27, %v717_v7  ;;  %v3332_v15 = vld [vmem:[#allocation8 + $0x40] sm:$0xff] }
 0x153   : > { %1182 = vmatpush.bf16.msrb.mxu1 %v3084_v1  ;;  %944 = vmatpush.bf16.msra.mxu2 %v3323_v49  ;;  %v714_v4 = vsub.f32 %v3202_v31, %v645_v52 }
 0x154   : > { %749 = vrot.lane.b32.xlu1 %v737_v26, %s2723_s29 }
 0x155   : > { %v671_v41 = vpop.f32.mrf.mxu2 }
 0x156   : > { %v721_v38 = vsub.f32 %v3256_v20, %v671_v41 }
 0x157   : > { %v411_v56 = vpop.f32.mrf.mxu0  ;;  %1183 = vmatpush.bf16.msrb.mxu1 %v3094_v5  ;;  %945 = vmatpush.bf16.msra.mxu2 %v3332_v15 }
 0x158   : > { %v730_v58 = vmul.f32 %v3269_v27, %v721_v38 }
 0x15a   : > { %v738_v40 = vadd.f32 %v730_v58, %v713_v34  ;;  %v647_v34 = vpop.f32.mrf.mxu1 }
 0x15b   : > { %1184 = vmatpush.bf16.msrb.mxu1 %v3115_v14  ;;  %1149 = vmatpush.bf16.msrb.mxu2 %v2943_v61  ;;  %v715_v31 = vsub.f32 %v3208_v47, %v647_v34 }
 0x15c   : > { %751 = vrot.lane.b32.xlu1 %v738_v40, %s2723_s29 }
 0x15d   : > { %v674_v20 = vpop.f32.mrf.mxu2 }
 0x15e   : > { %v722_v63 = vsub.f32 %v3264_v8, %v674_v20  ;;  %v734_v8 = vadd.f32 %v726_v13, %v709_v33  ;;  %v778_v20 = vpack.c.bf16 %v3179_v2, %v3174_v62  ;;  %v780_v13 = vpack.c.bf16 %v3195_v17, %v3191_v25 }
 0x15f   : > { %v413_v22 = vpop.f32.mrf.mxu0  ;;  %1185 = vmatpush.bf16.msrb.mxu1 %v3129_v29  ;;  %1150 = vmatpush.bf16.msrb.mxu2 %v2953_v0 }
 0x160   : > { %v731_v26 = vmul.f32 %v3269_v27, %v722_v63  ;;  %v777_v41 = vpack.c.bf16 %v413_v22, %v411_v56 }
 0x162   : > { %927 = vmatmul.bf16.gmra.mxu1 %v777_v41  ;;  %v739_v38 = vadd.f32 %v731_v26, %v714_v4 }
 0x163   : > { %1151 = vmatpush.bf16.msrb.mxu2 %v2962_v3 }
 0x164   : > { %753 = vrot.lane.b32.xlu0 %v739_v38, %s2723_s29  ;;  %743 = vrot.lane.b32.xlu1 %v734_v8, %s2723_s29  ;;  %v3376_v38 = vld [vmem:[#allocation3] sm:$0xff] }
 0x165   : > { %v676_v58 = vpop.f32.mrf.mxu2 }
 0x166   : > { %v723_v28 = vsub.f32 %v3272_v54, %v676_v58 }
 0x167   : > { %v416_v48 = vpop.f32.mrf.mxu0  ;;  %1152 = vmatpush.bf16.msrb.mxu2 %v2971_v6 }
 0x168   : > { %v732_v56 = vmul.f32 %v3269_v27, %v723_v28  ;;  %v3379_v28 = vld [vmem:[#allocation3 + $0x18] sm:$0xff] }
 0x16a   : > { %v740_v7 = vadd.f32 %v732_v56, %v715_v31 }
 0x16b   : > { %1153 = vmatpush.bf16.msrb.mxu2 %v2994_v11 }
 0x16c   : > { %755 = vrot.lane.b32.xlu0 %v740_v7, %s2723_s29 }
 0x16f   : > { %v418_v40 = vpop.f32.mrf.mxu0  ;;  %1154 = vmatpush.bf16.msrb.mxu2 %v3010_v19 }
 0x170   : > { %v779_v52 = vpack.c.bf16 %v418_v40, %v416_v48 }
 0x172   : > { %932 = vmatmul.bf16.gmra.mxu1 %v779_v52 }
 0x173   : > { %1155 = vmatpush.bf16.msrb.mxu2 %v3031_v39 }
 0x174   : > { %741 = vrot.lane.b32.xlu0 %v3279_v55, %s2723_s29  ;;  %v776_v55 = vpack.c.bf16 %v3158_v37, %v3153_v42  ;;  %v688_v42 = vpop.f32.mrf.mxu3 }
 0x175   : > { %v975_v31 = vadd.f32 %v688_v42, %v3206_v10 }
 0x177   : > { %v421_v54 = vpop.f32.mrf.mxu0  ;;  %1156 = vmatpush.bf16.msrb.mxu2 %v3042_v44 }
 0x17c   : > { %v690_v4 = vpop.f32.mrf.mxu3 }
 0x17f   : > { %v423_v27 = vpop.f32.mrf.mxu0 }
 0x180   : > { %v774_v47 = vpack.c.bf16 %v423_v27, %v421_v54  ;;  %v976_v54 = vadd.f32 %v690_v4, %v3210_v18 }
 0x182   : > { %946 = vmatmul.bf16.vlgmr.msra.gmra.mxu2 %v774_v47 }
 0x183   : > { %1272 = vmatpush.bf16.msra.mxu2 %v3223_v24 }
 0x184   : > { %v693_v25 = vpop.f32.mrf.mxu3 }
 0x187   : > { %1273 = vmatpush.bf16.msra.mxu2 %v3228_v35 }
 0x18b   : > { %1274 = vmatpush.bf16.msra.mxu2 %v3231_v9 }
 0x18f   : > { %1275 = vmatpush.bf16.msra.mxu2 %v3236_v45 }
 0x192   : > { %951 = vmatmul.bf16.gmra.mxu2 %v776_v55 }
 0x193   : > { %1276 = vmatpush.bf16.msra.mxu2 %v3239_v57 }
 0x197   : > { %1277 = vmatpush.bf16.msra.mxu2 %v3244_v53 }
 0x19b   : > { %1278 = vmatpush.bf16.msra.mxu2 %v3249_v16 }
 0x19e   : > { %v746_v47 = vpop.permute.xlu2 %745 }
 0x19f   : > { %1279 = vmatpush.bf16.msra.mxu2 %v3254_v21 }
 0x1a2   : > { %956 = vmatmul.bf16.gmra.mxu2 %v778_v20 }
 0x1b2   : > { %961 = vmatmul.bf16.gmra.mxu2 %v780_v13  ;;  %v695_v13 = vpop.f32.mrf.mxu3 }
 0x1bf   : > { %v918_v37 = vpop.f32.mrf.mxu1 }
 0x1c6   : > { %v750_v22 = vpop.permute.xlu1 %749 }
 0x1c7   : > { %v920_v26 = vpop.f32.mrf.mxu1 }
 0x1ce   : > { %v3374_v41 = vpop.permute.xlu1 %751 }
 0x1cf   : > { %v923_v58 = vpop.f32.mrf.mxu1 }
 0x1d6   : > { %v3370_v63 = vpop.permute.xlu0 %753  ;;  %v744_v48 = vpop.permute.xlu1 %743 }
 0x1d7   : > { %v766_v7 = vmul.f32 %v3379_v28, %v744_v48  ;;  %v925_v10 = vpop.f32.mrf.mxu1 }
 0x1de   : > { %v3372_v33 = vpop.permute.xlu0 %755 }
 0x1e6   : > { %v742_v8 = vpop.permute.xlu0 %741 }
 0x1e7   : > { %v765_v34 = vmul.f32 %v3376_v38, %v742_v8  ;;  %v3390_v8 = vld [vmem:[#allocation3 + $0x10] sm:$0xff] }
 0x1e8   : > { %v767_v18 = vmul.f32 %v3390_v8, %v746_v47 }
 0x205   : > { %v947_v62 = vpop.f32.mrf.mxu2 }
 0x206   : > { %v948_v2 = vadd.f32 %v947_v62, %v918_v37  ;;  %v4124_v62 = vld [vmem:[#allocation22_spill] sm:$0xff] }
 0x208   : > { %v967_v17 = vadd.f32 %v948_v2, %v765_v34 }
 0x20a   : > { %v3383_v40 = vadd.f32 %v975_v31, %v967_v17  ;;  %v4125_v17 = vld [vmem:[#allocation23_spill] sm:$0xff]  ;;  %v3399_v31 = vld [vmem:[#allocation3 + $0x20] sm:$0xff] }
 0x20c   : > { %4122 = vst [vmem:[#allocation53_spill] sm:$0xff] %v3383_v40  ;;  %v991_v55 = vmul.f32 0.035714287, %v3383_v40  ;;  %v4158_v40 = vld [vmem:[#allocation32_spill] sm:$0xff] }
 0x20d   : > { %v949_v56 = vpop.f32.mrf.mxu2 }
 0x20e   : > { %v950_v52 = vadd.f32 %v949_v56, %v920_v26  ;;  %v999_v2 = vadd.f32 %v991_v55, %v4124_v62  ;;  %v748_v56 = vpop.permute.xlu2 %747 }
 0x210   : > { %v968_v27 = vadd.f32 %v950_v52, %v766_v7  ;;  %v4126_v7 = vld [vmem:[#allocation47_spill] sm:$0xff] }
 0x211   : > { %v977_v52 = vadd.f32 %v693_v25, %v4126_v7  ;;  %v4131_v7 = vld [vmem:[#allocation20_spill] sm:$0xff] }
 0x212   : > { %v3387_v20 = vadd.f32 %v976_v54, %v968_v27  ;;  %v768_v27 = vmul.f32 %v3399_v31, %v748_v56 }
 0x214   : > { %4123 = vst [vmem:[#allocation54_spill] sm:$0xff] %v3387_v20  ;;  %v992_v37 = vmul.f32 0.035714287, %v3387_v20 }
 0x215   : > { %v952_v42 = vpop.f32.mrf.mxu2 }
 0x216   : > { %v953_v34 = vadd.f32 %v952_v42, %v923_v58  ;;  %v1000_v26 = vadd.f32 %v992_v37, %v4125_v17  ;;  %v698_v58 = vpop.f32.mrf.mxu3  ;;  %v928_v37 = vpop.f32.mrf.mxu1  ;;  %v4128_v42 = vld [vmem:[#allocation48_spill] sm:$0xff] }
 0x217   : > { %v978_v62 = vadd.f32 %v695_v13, %v4128_v42 }
 0x218   : > { %v3395_v4 = vpack.c.bf16 %v1000_v26, %v999_v2  ;;  %v969_v48 = vadd.f32 %v953_v34, %v767_v18  ;;  %v3413_v26 = vld [vmem:[#allocation3 + $0x28] sm:$0xff] }
 0x21a   : > { %1128 = vmatmul.bf16.vlgmr.msra.gmra.mxu1 %v3395_v4  ;;  %1157 = vmatmul.bf16.vlgmr.msrb.gmra.mxu2 %v3395_v4  ;;  %v3404_v55 = vadd.f32 %v977_v52, %v969_v48  ;;  %v4130_v48 = vld [vmem:[#allocation19_spill] sm:$0xff] }
 0x21b   : > { %1301 = vmatpush.bf16.msra.mxu1 %v3288_v59 }
 0x21c   : > { %4127 = vst [vmem:[#allocation22_spill] sm:$0xff] %v3404_v55  ;;  %v993_v34 = vmul.f32 0.035714287, %v3404_v55 }
 0x21d   : > { %v954_v54 = vpop.f32.mrf.mxu2 }
 0x21e   : > { %v955_v47 = vadd.f32 %v954_v54, %v925_v10  ;;  %v1001_v56 = vadd.f32 %v993_v34, %v4130_v48  ;;  %v700_v13 = vpop.f32.mrf.mxu3  ;;  %v769_v54 = vmul.f32 %v3413_v26, %v750_v22  ;;  %v4134_v48 = vld [vmem:[#allocation50_spill] sm:$0xff] }
 0x21f   : > { %1302 = vmatpush.bf16.msra.mxu1 %v3293_v30 }
 0x220   : > { %v970_v2 = vadd.f32 %v955_v47, %v768_v27  ;;  %v930_v47 = vpop.f32.mrf.mxu1 }
 0x222   : > { %v3409_v17 = vadd.f32 %v978_v62, %v970_v2  ;;  %v3423_v62 = vld [vmem:[#allocation3 + $0x8] sm:$0xff] }
 0x223   : > { %1303 = vmatpush.bf16.msra.mxu1 %v3299_v43 }
 0x224   : > { %4129 = vst [vmem:[#allocation23_spill] sm:$0xff] %v3409_v17  ;;  %v994_v25 = vmul.f32 0.035714287, %v3409_v17  ;;  %v3436_v17 = vld [vmem:[#allocation3 + $0x30] sm:$0xff] }
 0x225   : > { %v957_v18 = vpop.f32.mrf.mxu2 }
 0x226   : > { %v958_v10 = vadd.f32 %v957_v18, %v928_v37  ;;  %v1002_v52 = vadd.f32 %v994_v25, %v4131_v7  ;;  %v4132_v37 = vld [vmem:[#allocation49_spill] sm:$0xff]  ;;  %v770_v25 = vmul.f32 %v3423_v62, %v3374_v41  ;;  %v703_v7 = vpop.f32.mrf.mxu3 }
 0x227   : > { %1304 = vmatpush.bf16.msra.mxu1 %v3305_v50  ;;  %v979_v2 = vadd.f32 %v698_v58, %v4132_v37  ;;  %v4136_v37 = vld [vmem:[#allocation15_spill] sm:$0xff] }
 0x228   : > { %v3419_v27 = vpack.c.bf16 %v1002_v52, %v1001_v56  ;;  %v971_v42 = vadd.f32 %v958_v10, %v769_v54  ;;  %v980_v56 = vadd.f32 %v700_v13, %v4134_v48  ;;  %v933_v58 = vpop.f32.mrf.mxu1 }
 0x22a   : > { %1133 = vmatmul.bf16.gmra.mxu1 %v3419_v27  ;;  %1162 = vmatmul.bf16.gmra.mxu2 %v3419_v27  ;;  %v3429_v18 = vadd.f32 %v979_v2, %v971_v42 }
 0x22b   : > { %1305 = vmatpush.bf16.msra.mxu1 %v3311_v32 }
 0x22c   : > { %4133 = vst [vmem:[#allocation47_spill] sm:$0xff] %v3429_v18  ;;  %v995_v52 = vmul.f32 0.035714287, %v3429_v18 }
 0x22d   : > { %v959_v34 = vpop.f32.mrf.mxu2 }
 0x22e   : > { %v960_v22 = vadd.f32 %v959_v34, %v930_v47  ;;  %v771_v47 = vmul.f32 %v3436_v17, %v3370_v63  ;;  %v1003_v2 = vadd.f32 %v995_v52, %v4136_v37  ;;  %v4137_v34 = vld [vmem:[#allocation16_spill] sm:$0xff]  ;;  %v705_v55 = vpop.f32.mrf.mxu3 }
 0x22f   : > { %1306 = vmatpush.bf16.msra.mxu1 %v3317_v12 }
 0x230   : > { %v972_v10 = vadd.f32 %v960_v22, %v770_v25  ;;  %v4138_v22 = vld [vmem:[#allocation51_spill] sm:$0xff]  ;;  %v935_v20 = vpop.f32.mrf.mxu1 }
 0x231   : > { %v981_v48 = vadd.f32 %v703_v7, %v4138_v22 }
 0x232   : > { %v3434_v54 = vadd.f32 %v980_v56, %v972_v10 }
 0x233   : > { %1307 = vmatpush.bf16.msra.mxu1 %v3323_v49 }
 0x234   : > { %4135 = vst [vmem:[#allocation48_spill] sm:$0xff] %v3434_v54  ;;  %v996_v41 = vmul.f32 0.035714287, %v3434_v54  ;;  %v3448_v54 = vld [vmem:[#allocation3 + $0x38] sm:$0xff] }
 0x235   : > { %v962_v42 = vpop.f32.mrf.mxu2  ;;  %v772_v52 = vmul.f32 %v3448_v54, %v3372_v33  ;;  %v4144_v33 = vld [vmem:[#allocation25_spill] sm:$0xff] }
 0x236   : > { %v963_v13 = vadd.f32 %v962_v42, %v933_v58  ;;  %v1004_v25 = vadd.f32 %v996_v41, %v4137_v34  ;;  %v4140_v41 = vld [vmem:[#allocation52_spill] sm:$0xff] }
 0x237   : > { %1308 = vmatpush.bf16.msra.mxu1 %v3332_v15  ;;  %v982_v42 = vadd.f32 %v705_v55, %v4140_v41  ;;  %v4147_v55 = vld [vmem:[#allocation33_spill] sm:$0xff] }
 0x238   : > { %v973_v56 = vadd.f32 %v963_v13, %v771_v47  ;;  %v1009_v10 = vpack.c.bf16 %v1004_v25, %v1003_v2  ;;  %v4142_v13 = vld [vmem:[#allocation13_spill] sm:$0xff]  ;;  %v4143_v25 = vld [vmem:[#allocation14_spill] sm:$0xff] }
 0x23a   : > { %v3446_v18 = vadd.f32 %v981_v48, %v973_v56  ;;  %1138 = vmatmul.bf16.gmra.mxu1 %v1009_v10  ;;  %1167 = vmatmul.bf16.gmra.mxu2 %v1009_v10  ;;  %v4153_v56 = vld [vmem:[#allocation43_spill] sm:$0xff] }
 0x23c   : > { %4139 = vst [vmem:[#allocation19_spill] sm:$0xff] %v3446_v18  ;;  %v997_v7 = vmul.f32 0.035714287, %v3446_v18 }
 0x23d   : > { %v964_v63 = vpop.f32.mrf.mxu2 }
 0x23e   : > { %v965_v58 = vadd.f32 %v964_v63, %v935_v20  ;;  %v1005_v34 = vadd.f32 %v997_v7, %v4142_v13  ;;  %v4145_v20 = vld [vmem:[#allocation29_spill] sm:$0xff] }
 0x240   : > { %v974_v37 = vadd.f32 %v965_v58, %v772_v52  ;;  %v4154_v52 = vld [vmem:[#allocation44_spill] sm:$0xff] }
 0x242   : > { %v3454_v47 = vadd.f32 %v982_v42, %v974_v37  ;;  %v4155_v42 = vld [vmem:[#allocation45_spill] sm:$0xff] }
 0x244   : > { %4141 = vst [vmem:[#allocation20_spill] sm:$0xff] %v3454_v47  ;;  %v998_v2 = vmul.f32 0.035714287, %v3454_v47 }
 0x246   : > { %v1006_v22 = vadd.f32 %v998_v2, %v4143_v25 }
 0x248   : > { %v1010_v48 = vpack.c.bf16 %v1006_v22, %v1005_v34  ;;  %v4156_v34 = vld [vmem:[#allocation46_spill] sm:$0xff] }
 0x24a   : > { %1015 = vmatpush.bf16.msrb.mxu3 %v1010_v48  ;;  %1143 = vmatmul.bf16.gmra.mxu1 %v1010_v48 }
 0x24b   : > { %1172 = vmatmul.bf16.gmra.mxu2 %v1010_v48 }
 0x24e   : > { %1016 = vmatpush.bf16.msrb.mxu3 %v1009_v10 }
 0x252   : > { %1017 = vmatpush.bf16.msrb.mxu3 %v3419_v27 }
 0x256   : > { %1018 = vmatpush.bf16.msrb.mxu3 %v3395_v4 }
 0x259   : > { %2431 = vmatmul.msk.bf16.vlgmr.msrb.gmra.mxu3 %vm291_vm4, %v4144_v33 }
 0x25a   : > { %2555 = vmatpush.bf16.msra.mxu3 %v3223_v24  ;;  %1186 = vmatmul.bf16.vlgmr.msrb.gmra.mxu1 %v3395_v4  ;;  %v4146_v4 = vld [vmem:[#allocation31_spill] sm:$0xff] }
 0x25b   : > { %1528 = vmatpush.bf16.msrb.mxu1 %v2943_v61 }
 0x25e   : > { %2556 = vmatpush.bf16.msra.mxu3 %v3228_v35 }
 0x25f   : > { %1529 = vmatpush.bf16.msrb.mxu1 %v2953_v0 }
 0x262   : > { %2557 = vmatpush.bf16.msra.mxu3 %v3231_v9 }
 0x263   : > { %1530 = vmatpush.bf16.msrb.mxu1 %v2962_v3 }
 0x266   : > { %2558 = vmatpush.bf16.msra.mxu3 %v3236_v45 }
 0x267   : > { %1531 = vmatpush.bf16.msrb.mxu1 %v2971_v6 }
 0x269   : > { %2432 = vmatmul.msk.bf16.gmra.mxu3 %vm291_vm4, %v4145_v20 }
 0x26a   : > { %2559 = vmatpush.bf16.msra.mxu3 %v3239_v57  ;;  %1191 = vmatmul.bf16.gmra.mxu1 %v3419_v27 }
 0x26b   : > { %1532 = vmatpush.bf16.msrb.mxu1 %v2994_v11 }
 0x26e   : > { %2560 = vmatpush.bf16.msra.mxu3 %v3244_v53 }
 0x26f   : > { %1533 = vmatpush.bf16.msrb.mxu1 %v3010_v19 }
 0x272   : > { %2561 = vmatpush.bf16.msra.mxu3 %v3249_v16 }
 0x273   : > { %1534 = vmatpush.bf16.msrb.mxu1 %v3031_v39 }
 0x276   : > { %2562 = vmatpush.bf16.msra.mxu3 %v3254_v21 }
 0x277   : > { %1535 = vmatpush.bf16.msrb.mxu1 %v3042_v44 }
 0x279   : > { %2433 = vmatmul.msk.bf16.gmra.mxu3 %vm291_vm4, %v4146_v4 }
 0x27a   : > { %1679 = vmatpush.bf16.msrb.mxu3 %v3288_v59  ;;  %1196 = vmatmul.bf16.gmra.mxu1 %v1009_v10  ;;  %v4148_v59 = vld [vmem:[#allocation34_spill] sm:$0xff] }
 0x27e   : > { %1680 = vmatpush.bf16.msrb.mxu3 %v3293_v30  ;;  %v4149_v30 = vld [vmem:[#allocation36_spill] sm:$0xff] }
 0x282   : > { %1681 = vmatpush.bf16.msrb.mxu3 %v3299_v43  ;;  %v4150_v43 = vld [vmem:[#allocation38_spill] sm:$0xff] }
 0x286   : > { %1682 = vmatpush.bf16.msrb.mxu3 %v3305_v50  ;;  %v4151_v50 = vld [vmem:[#allocation41_spill] sm:$0xff] }
 0x289   : > { %2434 = vmatmul.msk.bf16.gmra.mxu3 %vm291_vm4, %v4147_v55 }
 0x28a   : > { %1683 = vmatpush.bf16.msrb.mxu3 %v3311_v32  ;;  %1201 = vmatmul.bf16.gmra.mxu1 %v1010_v48  ;;  %v4152_v32 = vld [vmem:[#allocation42_spill] sm:$0xff]  ;;  %v3520_v48 = vstv %s138_s5 }
 0x28e   : > { %1684 = vmatpush.bf16.msrb.mxu3 %v3317_v12 }
 0x292   : > { %1685 = vmatpush.bf16.msrb.mxu3 %v3323_v49 }
 0x296   : > { %1686 = vmatpush.bf16.msrb.mxu3 %v3332_v15 }
 0x297   : > { %v1129_v12 = vpop.f32.mrf.mxu1 }
 0x299   : > { %2435 = vmatmul.msk.bf16.gmra.mxu3 %vm291_vm4, %v4148_v59 }
 0x29d   : > { %v1158_v7 = vpop.f32.mrf.mxu2 }
 0x29f   : > { %v1131_v25 = vpop.f32.mrf.mxu1 }
 0x2a5   : > { %v1160_v13 = vpop.f32.mrf.mxu2 }
 0x2a7   : > { %v1134_v59 = vpop.f32.mrf.mxu1 }
 0x2a9   : > { %2436 = vmatmul.msk.bf16.gmra.mxu3 %vm291_vm4, %v4149_v30 }
 0x2ad   : > { %v1163_v55 = vpop.f32.mrf.mxu2 }
 0x2b9   : > { %2437 = vmatmul.msk.bf16.gmra.mxu3 %vm291_vm4, %v4150_v43 }
 0x2c9   : > { %2438 = vmatmul.msk.bf16.gmra.mxu3 %vm291_vm4, %v4151_v50 }
 0x2d9   : > { %2439 = vmatmul.msk.bf16.gmra.mxu3 %vm291_vm4, %v4152_v32 }
 0x2dc   : > { %v1020_v49 = vpop.f32.mrf.mxu3 }
 0x2dd   : > { %v1207_v27 = vsub.f32 %v1020_v49, %v1129_v12  ;;  %v3527_v12 = vld [vmem:[%s4030_s1 + $0x68] sm:$0xff] }
 0x2e4   : > { %v1022_v15 = vpop.f32.mrf.mxu3 }
 0x2e5   : > { %v1208_v50 = vsub.f32 %v1022_v15, %v1131_v25 }
 0x2e9   : > { %2440 = vmatmul.msk.bf16.gmra.mxu3 %vm291_vm4, %v4153_v56  ;;  %v1165_v56 = vpop.f32.mrf.mxu2 }
 0x2ec   : > { %v3507_v10 = vpop.f32.mrf.mxu3 }
 0x2f4   : > { %v1027_v63 = vpop.f32.mrf.mxu3 }
 0x2f9   : > { %2441 = vmatmul.msk.bf16.gmra.mxu3 %vm291_vm4, %v4154_v52 }
 0x2fc   : > { %v1030_v58 = vpop.f32.mrf.mxu3 }
 0x304   : > { %v3511_v41 = vpop.f32.mrf.mxu3 }
 0x309   : > { %2442 = vmatmul.msk.bf16.gmra.mxu3 %vm291_vm4, %v4155_v42  ;;  %v1136_v42 = vpop.f32.mrf.mxu1 }
 0x30a   : > { %v1210_v18 = vsub.f32 %v1027_v63, %v1136_v42 }
 0x30c   : > { %v1035_v37 = vpop.f32.mrf.mxu3 }
 0x314   : > { %v3516_v2 = vpop.f32.mrf.mxu3 }
 0x319   : > { %2443 = vmatmul.msk.bf16.gmra.mxu3 %vm291_vm4, %v4156_v34  ;;  %v1139_v34 = vpop.f32.mrf.mxu1 }
 0x31a   : > { %v1211_v25 = vsub.f32 %v1030_v58, %v1139_v34 }
 0x31c   : > { %v1040_v22 = vpop.f32.mrf.mxu3 }
 0x31d   : > { %v1215_v33 = vsub.f32 %v1040_v22, %v1158_v7  ;;  %v1168_v7 = vpop.f32.mrf.mxu2  ;;  %v4157_v22 = vld [vmem:[#allocation30_spill] sm:$0xff] }
 0x31f   : > { %v1224_v20 = vmul.f32 %v3520_v48, %v1215_v33 }
 0x321   : > { %v1232_v4 = vadd.f32 %v1224_v20, %v1207_v27  ;;  %v1141_v47 = vpop.f32.mrf.mxu1 }
 0x324   : > { %v1042_v30 = vpop.f32.mrf.mxu3 }
 0x325   : > { %v1216_v43 = vsub.f32 %v1042_v30, %v1160_v13  ;;  %v1170_v20 = vpop.f32.mrf.mxu2 }
 0x327   : > { %v1225_v32 = vmul.f32 %v3520_v48, %v1216_v43 }
 0x329   : > { %2444 = vmatmul.msk.bf16.gmra.mxu3 %vm291_vm4, %v3527_v12  ;;  %v1233_v49 = vadd.f32 %v1225_v32, %v1208_v50  ;;  %v1144_v58 = vpop.f32.mrf.mxu1 }
 0x32c   : > { %v1045_v52 = vpop.f32.mrf.mxu3 }
 0x334   : > { %v1047_v27 = vpop.f32.mrf.mxu3 }
 0x335   : > { %v1218_v30 = vsub.f32 %v1047_v27, %v1165_v56 }
 0x337   : > { %v1227_v32 = vmul.f32 %v3520_v48, %v1218_v30 }
 0x339   : > { %2445 = vmatmul.msk.bf16.gmra.mxu3 %vm291_vm4, %v4157_v22  ;;  %v1235_v29 = vadd.f32 %v1227_v32, %v1210_v18  ;;  %v1173_v22 = vpop.f32.mrf.mxu2  ;;  %v1212_v18 = vsub.f32 %v3511_v41, %v1141_v47 }
 0x33c   : > { %v1050_v15 = vpop.f32.mrf.mxu3 }
 0x33d   : > { %v1219_v13 = vsub.f32 %v1050_v15, %v1168_v7  ;;  %v1213_v15 = vsub.f32 %v1035_v37, %v1144_v58  ;;  %v3548_v37 = vld [vmem:[%s4030_s1 + $0x80] sm:$0xff] }
 0x33f   : > { %v1228_v33 = vmul.f32 %v3520_v48, %v1219_v13 }
 0x341   : > { %v1236_v43 = vadd.f32 %v1228_v33, %v1211_v25  ;;  %v1175_v25 = vpop.f32.mrf.mxu2 }
 0x343   : > { %1248 = vrot.lane.b32.xlu1 %v1236_v43, %s2723_s29  ;;  %v1217_v43 = vsub.f32 %v1045_v52, %v1163_v55 }
 0x344   : > { %v1052_v50 = vpop.f32.mrf.mxu3 }
 0x345   : > { %v1220_v27 = vsub.f32 %v1052_v50, %v1170_v20  ;;  %v1226_v41 = vmul.f32 %v3520_v48, %v1217_v43 }
 0x347   : > { %v1229_v63 = vmul.f32 %v3520_v48, %v1220_v27 }
 0x349   : > { %2446 = vmatmul.msk.bf16.gmra.mxu3 %vm291_vm4, %v4158_v40  ;;  %v1146_v40 = vpop.f32.mrf.mxu1  ;;  %v1237_v20 = vadd.f32 %v1229_v63, %v1212_v18 }
 0x34b   : > { %1246 = vrot.lane.b32.xlu1 %v1235_v29, %s2723_s29  ;;  %v1214_v29 = vsub.f32 %v3516_v2, %v1146_v40  ;;  %v1209_v2 = vsub.f32 %v3507_v10, %v1134_v59  ;;  %v4161_v59 = vld [vmem:[#allocation39_spill] sm:$0xff] }
 0x34c   : > { %v1055_v7 = vpop.f32.mrf.mxu3 }
 0x34d   : > { %v1221_v34 = vsub.f32 %v1055_v7, %v1173_v22  ;;  %v1234_v55 = vadd.f32 %v1226_v41, %v1209_v2  ;;  %v4159_v22 = vld [vmem:[#allocation35_spill] sm:$0xff] }
 0x34f   : > { %v1230_v56 = vmul.f32 %v3520_v48, %v1221_v34  ;;  %v4160_v34 = vld [vmem:[#allocation37_spill] sm:$0xff] }
 0x351   : > { %v1238_v13 = vadd.f32 %v1230_v56, %v1213_v15 }
 0x353   : > { %1252 = vrot.lane.b32.xlu2 %v1238_v13, %s2723_s29 }
 0x354   : > { %v1057_v33 = vpop.f32.mrf.mxu3 }
 0x355   : > { %v1222_v42 = vsub.f32 %v1057_v33, %v1175_v25 }
 0x357   : > { %v1231_v30 = vmul.f32 %v3520_v48, %v1222_v42 }
 0x359   : > { %2447 = vmatmul.msk.bf16.gmra.mxu3 %vm291_vm4, %v3548_v37  ;;  %v1239_v50 = vadd.f32 %v1231_v30, %v1214_v29 }
 0x35b   : > { %1250 = vrot.lane.b32.xlu2 %v1237_v20, %s2723_s29  ;;  %1254 = vrot.lane.b32.xlu0 %v1239_v50, %s2723_s29 }
 0x35c   : > { %v1060_v47 = vpop.f32.mrf.mxu3 }
 0x363   : > { %1240 = vrot.lane.b32.xlu2 %v1232_v4, %s2723_s29  ;;  %1244 = vrot.lane.b32.xlu0 %v1234_v55, %s2723_s29 }
 0x364   : > { %v1062_v52 = vpop.f32.mrf.mxu3 }
 0x365   : > { %v1264_v32 = vpack.c.bf16 %v1062_v52, %v1060_v47 }
 0x367   : > { %1280 = vmatmul.bf16.vlgmr.msra.gmra.mxu2 %v1264_v32 }
 0x369   : > { %2448 = vmatmul.msk.bf16.gmra.mxu3 %vm291_vm4, %v4159_v22 }
 0x36b   : > { %1242 = vrot.lane.b32.xlu0 %v1233_v49, %s2723_s29 }
 0x36c   : > { %v1065_v58 = vpop.f32.mrf.mxu3 }
 0x374   : > { %v1067_v7 = vpop.f32.mrf.mxu3 }
 0x375   : > { %v1266_v27 = vpack.c.bf16 %v1067_v7, %v1065_v58 }
 0x379   : > { %2449 = vmatmul.msk.bf16.gmra.mxu3 %vm291_vm4, %v4160_v34 }
 0x37c   : > { %v1070_v15 = vpop.f32.mrf.mxu3 }
 0x384   : > { %v1072_v10 = vpop.f32.mrf.mxu3 }
 0x385   : > { %v1268_v33 = vpack.c.bf16 %v1072_v10, %v1070_v15 }
 0x389   : > { %2450 = vmatmul.msk.bf16.gmra.mxu3 %vm291_vm4, %v4161_v59 }
 0x38c   : > { %v1075_v4 = vpop.f32.mrf.mxu3 }
 0x394   : > { %v1077_v56 = vpop.f32.mrf.mxu3 }
 0x399   : > { %1285 = vmatmul.bf16.vlgmr.msra.gmra.mxu3 %v1266_v27 }
 0x39a   : > { %1906 = vmatpush.bf16.msra.mxu3 %v2943_v61 }
 0x39c   : > { %v1080_v13 = vpop.f32.mrf.mxu3 }
 0x39e   : > { %1907 = vmatpush.bf16.msra.mxu3 %v2953_v0 }
 0x3a2   : > { %1908 = vmatpush.bf16.msra.mxu3 %v2962_v3  ;;  %v1270_v3 = vpack.c.bf16 %v1077_v56, %v1075_v4 }
 0x3a4   : > { %v1082_v49 = vpop.f32.mrf.mxu3 }
 0x3a5   : > { %v1265_v25 = vpack.c.bf16 %v1082_v49, %v1080_v13 }
 0x3a6   : > { %1909 = vmatpush.bf16.msra.mxu3 %v2971_v6 }
 0x3a7   : > { %1309 = vmatmul.bf16.vlgmr.msra.gmra.mxu1 %v1265_v25 }
 0x3a8   : > { %1650 = vmatpush.bf16.msra.mxu1 %v3223_v24 }
 0x3a9   : > { %1290 = vmatmul.bf16.gmra.mxu3 %v1268_v33 }
 0x3aa   : > { %1910 = vmatpush.bf16.msra.mxu3 %v2994_v11 }
 0x3ac   : > { %v1085_v63 = vpop.f32.mrf.mxu3  ;;  %1651 = vmatpush.bf16.msra.mxu1 %v3228_v35  ;;  %v1187_v35 = vpop.f32.mrf.mxu1 }
 0x3ad   : > { %v3589_v43 = vpop.permute.xlu2 %1252 }
 0x3ae   : > { %1911 = vmatpush.bf16.msra.mxu3 %v3010_v19 }
 0x3b0   : > { %1652 = vmatpush.bf16.msra.mxu1 %v3231_v9 }
 0x3b2   : > { %1912 = vmatpush.bf16.msra.mxu3 %v3031_v39 }
 0x3b4   : > { %v1087_v61 = vpop.f32.mrf.mxu3  ;;  %1653 = vmatpush.bf16.msra.mxu1 %v3236_v45  ;;  %v1189_v24 = vpop.f32.mrf.mxu1 }
 0x3b5   : > { %v1267_v0 = vpack.c.bf16 %v1087_v61, %v1085_v63  ;;  %v3597_v41 = vpop.permute.xlu2 %1250  ;;  %v1249_v61 = vpop.permute.xlu1 %1248 }
 0x3b6   : > { %1913 = vmatpush.bf16.msra.mxu3 %v3042_v44 }
 0x3b7   : > { %1314 = vmatmul.bf16.gmra.mxu1 %v1267_v0 }
 0x3b8   : > { %1654 = vmatpush.bf16.msra.mxu1 %v3239_v57 }
 0x3b9   : > { %1295 = vmatmul.bf16.gmra.mxu3 %v1270_v3 }
 0x3bc   : > { %v1090_v6 = vpop.f32.mrf.mxu3  ;;  %1655 = vmatpush.bf16.msra.mxu1 %v3244_v53  ;;  %v1192_v57 = vpop.f32.mrf.mxu1 }
 0x3bd   : > { %v1241_v22 = vpop.permute.xlu2 %1240 }
 0x3be   : > { %v1256_v34 = vmul.f32 %v1241_v22, %v3376_v38 }
 0x3c0   : > { %1656 = vmatpush.bf16.msra.mxu1 %v3249_v16 }
 0x3c4   : > { %v1092_v11 = vpop.f32.mrf.mxu3  ;;  %1657 = vmatpush.bf16.msra.mxu1 %v3254_v21  ;;  %v1194_v18 = vpop.f32.mrf.mxu1 }
 0x3c5   : > { %v1269_v19 = vpack.c.bf16 %v1092_v11, %v1090_v6 }
 0x3c7   : > { %1319 = vmatmul.bf16.gmra.mxu1 %v1269_v19  ;;  %v3611_v19 = vld [vmem:[#allocation2 + $0x30] sm:$0xff] }
 0x3cc   : > { %v1095_v39 = vpop.f32.mrf.mxu3  ;;  %v3581_v53 = vpop.f32.mrf.mxu1 }
 0x3cd   : > { %v3593_v50 = vpop.permute.xlu0 %1254 }
 0x3d4   : > { %v1097_v45 = vpop.f32.mrf.mxu3  ;;  %v3585_v30 = vpop.f32.mrf.mxu1 }
 0x3d5   : > { %v1271_v9 = vpack.c.bf16 %v1097_v45, %v1095_v39  ;;  %v1245_v55 = vpop.permute.xlu0 %1244 }
 0x3d7   : > { %1324 = vmatmul.bf16.gmra.mxu1 %v1271_v9 }
 0x3dc   : > { %v1100_v44 = vpop.f32.mrf.mxu3  ;;  %v3591_v20 = vpop.f32.mrf.mxu1 }
 0x3dd   : > { %v1243_v10 = vpop.permute.xlu0 %1242  ;;  %v1338_v4 = vadd.f32 %v1187_v35, %v1100_v44  ;;  %v1258_v35 = vmul.f32 %v1245_v55, %v3390_v8 }
 0x3de   : > { %v1257_v13 = vmul.f32 %v1243_v10, %v3379_v28  ;;  %v3614_v28 = vld [vmem:[#allocation2] sm:$0xff] }
 0x3e4   : > { %v1102_v42 = vpop.f32.mrf.mxu3  ;;  %v3599_v2 = vpop.f32.mrf.mxu1 }
 0x3e5   : > { %v1339_v33 = vadd.f32 %v1189_v24, %v1102_v42  ;;  %v1247_v42 = vpop.permute.xlu1 %1246 }
 0x3ea   : > { %v1281_v32 = vpop.f32.mrf.mxu2 }
 0x3ec   : > { %v1105_v40 = vpop.f32.mrf.mxu3 }
 0x3ed   : > { %v1340_v22 = vadd.f32 %v1192_v57, %v1105_v40  ;;  %v3632_v40 = vld [vmem:[#allocation2 + $0x18] sm:$0xff] }
 0x3f2   : > { %v1283_v56 = vpop.f32.mrf.mxu2 }
 0x3f4   : > { %v1107_v29 = vpop.f32.mrf.mxu3 }
 0x3f5   : > { %v1341_v8 = vadd.f32 %v1194_v18, %v1107_v29  ;;  %v4165_v18 = vld [vmem:[#allocation24_spill] sm:$0xff]  ;;  %v1260_v29 = vmul.f32 %v1249_v61, %v3413_v26 }
 0x3fc   : > { %v3583_v16 = vpop.f32.mrf.mxu3 }
 0x404   : > { %v3587_v21 = vpop.f32.mrf.mxu3 }
 0x405   : > { %v1343_v26 = vadd.f32 %v3585_v30, %v3587_v21  ;;  %v4168_v21 = vld [vmem:[#allocation28_spill] sm:$0xff] }
 0x40c   : > { %v3595_v47 = vpop.f32.mrf.mxu3 }
 0x414   : > { %v3601_v52 = vpop.f32.mrf.mxu3 }
 0x41c   : > { %v1286_v59 = vpop.f32.mrf.mxu3 }
 0x424   : > { %v1310_v58 = vpop.f32.mrf.mxu1  ;;  %v1288_v6 = vpop.f32.mrf.mxu3 }
 0x425   : > { %v1311_v7 = vadd.f32 %v1310_v58, %v1281_v32  ;;  %v4162_v32 = vld [vmem:[#allocation17_spill] sm:$0xff] }
 0x427   : > { %v1330_v15 = vadd.f32 %v1311_v7, %v1256_v34  ;;  %v1259_v7 = vmul.f32 %v1247_v42, %v3399_v31 }
 0x429   : > { %v3605_v49 = vadd.f32 %v1338_v4, %v1330_v15 }
 0x42b   : > { %v1370_v0 = vmul.f32 0.035714287, %v3605_v49 }
 0x42c   : > { %v1312_v27 = vpop.f32.mrf.mxu1  ;;  %v1291_v10 = vpop.f32.mrf.mxu3 }
 0x42d   : > { %v1313_v25 = vadd.f32 %v1312_v27, %v1283_v56  ;;  %v1378_v39 = vadd.f32 %v3611_v19, %v1370_v0  ;;  %v4164_v27 = vld [vmem:[#allocation21_spill] sm:$0xff] }
 0x42f   : > { %v1331_v63 = vadd.f32 %v1313_v25, %v1257_v13 }
 0x431   : > { %v3608_v3 = vadd.f32 %v1339_v33, %v1331_v63  ;;  %v3635_v33 = vld [vmem:[#allocation2 + $0x10] sm:$0xff] }
 0x433   : > { %v1371_v38 = vmul.f32 0.035714287, %v3608_v3 }
 0x434   : > { %v1315_v11 = vpop.f32.mrf.mxu1 }
 0x435   : > { %v1316_v45 = vadd.f32 %v1315_v11, %v1286_v59  ;;  %v1379_v9 = vadd.f32 %v3614_v28, %v1371_v38  ;;  %v4163_v59 = vld [vmem:[#allocation18_spill] sm:$0xff]  ;;  %v1293_v38 = vpop.f32.mrf.mxu3 }
 0x436   : > { %v4166_v11 = vld [vmem:[#allocation26_spill] sm:$0xff] }
 0x437   : > { %v3618_v44 = vpack.c.bf16 %v1379_v9, %v1378_v39  ;;  %v1332_v24 = vadd.f32 %v1316_v45, %v1258_v35  ;;  %v1342_v39 = vadd.f32 %v3581_v53, %v3583_v16  ;;  %v1261_v9 = vmul.f32 %v3597_v41, %v3423_v62  ;;  %v3655_v62 = vld [vmem:[#allocation2 + $0x8] sm:$0xff] }
 0x439   : > { %1507 = vmatmul.bf16.vlgmr.msrb.gmra.mxu0 %v3618_v44  ;;  %1536 = vmatmul.bf16.vlgmr.msrb.gmra.mxu1 %v3618_v44  ;;  %v3624_v34 = vadd.f32 %v1340_v22, %v1332_v24 }
 0x43a   : > { %1877 = vmatpush.bf16.msrb.mxu1 %v4162_v32 }
 0x43b   : > { %v1372_v4 = vmul.f32 0.035714287, %v3624_v34 }
 0x43c   : > { %v1317_v58 = vpop.f32.mrf.mxu1 }
 0x43d   : > { %v1318_v15 = vadd.f32 %v1317_v58, %v1288_v6  ;;  %v1380_v31 = vadd.f32 %v3632_v40, %v1372_v4  ;;  %v1296_v22 = vpop.f32.mrf.mxu3  ;;  %v4167_v58 = vld [vmem:[#allocation27_spill] sm:$0xff] }
 0x43e   : > { %1878 = vmatpush.bf16.msrb.mxu1 %v4163_v59 }
 0x43f   : > { %v1333_v55 = vadd.f32 %v1318_v15, %v1259_v7  ;;  %v1262_v15 = vmul.f32 %v3589_v43, %v3436_v17 }
 0x441   : > { %v3628_v56 = vadd.f32 %v1341_v8, %v1333_v55  ;;  %v1344_v8 = vadd.f32 %v3591_v20, %v3595_v47  ;;  %v3679_v47 = vld [vmem:[#allocation2 + $0x38] sm:$0xff] }
 0x442   : > { %1879 = vmatpush.bf16.msrb.mxu1 %v4164_v27  ;;  %v1263_v27 = vmul.f32 %v3593_v50, %v3448_v54 }
 0x443   : > { %v1373_v13 = vmul.f32 0.035714287, %v3628_v56 }
 0x444   : > { %v1320_v57 = vpop.f32.mrf.mxu1 }
 0x445   : > { %v1321_v25 = vadd.f32 %v1320_v57, %v1291_v10  ;;  %v1381_v63 = vadd.f32 %v3635_v33, %v1373_v13  ;;  %v1298_v55 = vpop.f32.mrf.mxu3 }
 0x446   : > { %1880 = vmatpush.bf16.msrb.mxu1 %v4165_v18  ;;  %v3676_v18 = vld [vmem:[#allocation2 + $0x28] sm:$0xff] }
 0x447   : > { %v1387_v0 = vpack.c.bf16 %v1381_v63, %v1380_v31  ;;  %v1334_v6 = vadd.f32 %v1321_v25, %v1260_v29  ;;  %v1345_v31 = vadd.f32 %v3599_v2, %v3601_v52  ;;  %v3686_v2 = vld [vmem:[%s4030_s1] sm:$0xff]  ;;  %v3694_v52 = vld [vmem:[%s4030_s1 + $0x8] sm:$0xff]  ;;  %v3701_v29 = vld [vmem:[%s4030_s1 + $0x10] sm:$0xff] }
 0x449   : > { %1512 = vmatmul.bf16.gmra.mxu0 %v1387_v0  ;;  %1541 = vmatmul.bf16.gmra.mxu1 %v1387_v0  ;;  %v3645_v35 = vadd.f32 %v1342_v39, %v1334_v6  ;;  %v3729_v6 = vld [vmem:[%s4030_s1 + $0x30] sm:$0xff]  ;;  %v3743_v39 = vld [vmem:[%s4030_s1 + $0x40] sm:$0xff] }
 0x44a   : > { %1881 = vmatpush.bf16.msrb.mxu1 %v4166_v11  ;;  %v3736_v11 = vld [vmem:[%s4030_s1 + $0x38] sm:$0xff] }
 0x44b   : > { %v1374_v42 = vmul.f32 0.035714287, %v3645_v35 }
 0x44c   : > { %v1322_v45 = vpop.f32.mrf.mxu1 }
 0x44d   : > { %v1323_v24 = vadd.f32 %v1322_v45, %v1293_v38  ;;  %v1382_v41 = vadd.f32 %v3655_v62, %v1374_v42  ;;  %v3722_v38 = vld [vmem:[%s4030_s1 + $0x28] sm:$0xff] }
 0x44e   : > { %1882 = vmatpush.bf16.msrb.mxu1 %v2868_v46  ;;  %v3658_v46 = vld [vmem:[#allocation2 + $0x20] sm:$0xff] }
 0x44f   : > { %v1335_v61 = vadd.f32 %v1323_v24, %v1261_v9 }
 0x451   : > { %v3651_v32 = vadd.f32 %v1343_v26, %v1335_v61  ;;  %v3750_v61 = vld [vmem:[%s4030_s1 + $0x48] sm:$0xff] }
 0x452   : > { %1883 = vmatpush.bf16.msrb.mxu1 %v4167_v58  ;;  %v3759_v58 = vld [vmem:[%s4030_s1 + $0x50] sm:$0xff] }
 0x453   : > { %v1375_v53 = vmul.f32 0.035714287, %v3651_v32  ;;  %4169 = vst [vmem:[#allocation49_spill] sm:$0xff] %v3759_v58 }
 0x454   : > { %v1325_v16 = vpop.f32.mrf.mxu1 }
 0x455   : > { %v1326_v7 = vadd.f32 %v1325_v16, %v1296_v22  ;;  %v1383_v30 = vadd.f32 %v3658_v46, %v1375_v53 }
 0x456   : > { %1884 = vmatpush.bf16.msrb.mxu1 %v4168_v21 }
 0x457   : > { %v1388_v10 = vpack.c.bf16 %v1383_v30, %v1382_v41  ;;  %v1336_v59 = vadd.f32 %v1326_v7, %v1262_v15  ;;  %v3768_v41 = vld [vmem:[%s4030_s1 + $0x58] sm:$0xff] }
 0x458   : > { %4170 = vst [vmem:[#allocation50_spill] sm:$0xff] %v3768_v41 }
 0x459   : > { %1517 = vmatmul.bf16.gmra.mxu0 %v1388_v10  ;;  %1546 = vmatmul.bf16.gmra.mxu1 %v1388_v10  ;;  %v3668_v13 = vadd.f32 %v1344_v8, %v1336_v59 }
 0x45b   : > { %v1376_v17 = vmul.f32 0.035714287, %v3668_v13 }
 0x45c   : > { %v1327_v4 = vpop.f32.mrf.mxu1 }
 0x45d   : > { %v1328_v57 = vadd.f32 %v1327_v4, %v1298_v55  ;;  %v1384_v20 = vadd.f32 %v3676_v18, %v1376_v17 }
 0x45f   : > { %v1337_v25 = vadd.f32 %v1328_v57, %v1263_v27 }
 0x461   : > { %v3673_v43 = vadd.f32 %v1345_v31, %v1337_v25 }
 0x463   : > { %v1377_v63 = vmul.f32 0.035714287, %v3673_v43 }
 0x465   : > { %v1385_v54 = vadd.f32 %v3679_v47, %v1377_v63 }
 0x467   : > { %v1389_v50 = vpack.c.bf16 %v1385_v54, %v1384_v20 }
 0x469   : > { %1394 = vmatpush.bf16.msrb.mxu2 %v1389_v50  ;;  %1522 = vmatmul.bf16.gmra.mxu0 %v1389_v50 }
 0x46a   : > { %1551 = vmatmul.bf16.gmra.mxu1 %v1389_v50 }
 0x46d   : > { %1395 = vmatpush.bf16.msrb.mxu2 %v1388_v10 }
 0x471   : > { %1396 = vmatpush.bf16.msrb.mxu2 %v1387_v0 }
 0x475   : > { %1397 = vmatpush.bf16.msrb.mxu2 %v3618_v44 }
 0x478   : > { %2451 = vmatmul.msk.bf16.vlgmr.msrb.gmra.mxu2 %vm291_vm4, %v3686_v2 }
 0x479   : > { %1565 = vmatmul.bf16.vlgmr.msra.gmra.mxu0 %v3618_v44  ;;  %v3708_v44 = vld [vmem:[%s4030_s1 + $0x18] sm:$0xff] }
 0x488   : > { %2452 = vmatmul.msk.bf16.gmra.mxu2 %vm291_vm4, %v3694_v52 }
 0x489   : > { %1570 = vmatmul.bf16.gmra.mxu0 %v1387_v0  ;;  %v3715_v0 = vld [vmem:[%s4030_s1 + $0x20] sm:$0xff] }
 0x498   : > { %2453 = vmatmul.msk.bf16.gmra.mxu2 %vm291_vm4, %v3701_v29 }
 0x499   : > { %1575 = vmatmul.bf16.gmra.mxu0 %v1388_v10  ;;  %v3775_v10 = vld [vmem:[%s4030_s1 + $0x60] sm:$0xff] }
 0x49a   : > { %4171 = vst [vmem:[#allocation15_spill] sm:$0xff] %v3775_v10 }
 0x4a8   : > { %2454 = vmatmul.msk.bf16.gmra.mxu2 %vm291_vm4, %v3708_v44 }
 0x4a9   : > { %1580 = vmatmul.bf16.gmra.mxu0 %v1389_v50 }
 0x4b6   : > { %v1508_v45 = vpop.f32.mrf.mxu0  ;;  %v1537_v30 = vpop.f32.mrf.mxu1 }
 0x4b8   : > { %2455 = vmatmul.msk.bf16.gmra.mxu2 %vm291_vm4, %v3715_v0 }
 0x4be   : > { %v1539_v15 = vpop.f32.mrf.mxu1  ;;  %v1510_v59 = vpop.f32.mrf.mxu0 }
 0x4c6   : > { %v1542_v57 = vpop.f32.mrf.mxu1  ;;  %v1513_v31 = vpop.f32.mrf.mxu0 }
 0x4c8   : > { %2456 = vmatmul.msk.bf16.gmra.mxu2 %vm291_vm4, %v3722_v38 }
 0x4ce   : > { %v1544_v50 = vpop.f32.mrf.mxu1 }
 0x4d8   : > { %2457 = vmatmul.msk.bf16.gmra.mxu2 %vm291_vm4, %v3729_v6 }
 0x4e8   : > { %2458 = vmatmul.msk.bf16.gmra.mxu2 %vm291_vm4, %v3736_v11 }
 0x4f8   : > { %2459 = vmatmul.msk.bf16.gmra.mxu2 %vm291_vm4, %v3743_v39 }
 0x4fb   : > { %v1399_v9 = vpop.f32.mrf.mxu2 }
 0x4fc   : > { %v1586_v24 = vsub.f32 %v1399_v9, %v1508_v45  ;;  %v1515_v9 = vpop.f32.mrf.mxu0 }
 0x503   : > { %v1401_v26 = vpop.f32.mrf.mxu2 }
 0x504   : > { %v1587_v63 = vsub.f32 %v1401_v26, %v1510_v59 }
 0x508   : > { %2460 = vmatmul.msk.bf16.gmra.mxu2 %vm291_vm4, %v3750_v61 }
 0x50b   : > { %v3754_v42 = vpop.f32.mrf.mxu2 }
 0x513   : > { %v1406_v22 = vpop.f32.mrf.mxu2 }
 0x518   : > { %2461 = vmatmul.msk.bf16.gmra.mxu2 %vm291_vm4, %v3759_v58  ;;  %v3796_v58 = vld [vmem:[%s4030_s1 + $0x78] sm:$0xff] }
 0x519   : > { %4173 = vst [vmem:[#allocation51_spill] sm:$0xff] %v3796_v58 }
 0x51b   : > { %v1409_v53 = vpop.f32.mrf.mxu2 }
 0x523   : > { %v3763_v16 = vpop.f32.mrf.mxu2 }
 0x528   : > { %2462 = vmatmul.msk.bf16.gmra.mxu2 %vm291_vm4, %v3768_v41  ;;  %v1547_v41 = vpop.f32.mrf.mxu1 }
 0x52b   : > { %v1414_v7 = vpop.f32.mrf.mxu2 }
 0x533   : > { %v1416_v21 = vpop.f32.mrf.mxu2 }
 0x538   : > { %2463 = vmatmul.msk.bf16.gmra.mxu2 %vm291_vm4, %v3775_v10 }
 0x53b   : > { %v1419_v8 = vpop.f32.mrf.mxu2 }
 0x53c   : > { %v1594_v55 = vsub.f32 %v1419_v8, %v1537_v30  ;;  %v1518_v30 = vpop.f32.mrf.mxu0  ;;  %v1549_v8 = vpop.f32.mrf.mxu1 }
 0x53d   : > { %v1590_v59 = vsub.f32 %v1409_v53, %v1518_v30 }
 0x53e   : > { %v1602_v4 = vmul.f32 %v1594_v55, %v3520_v48 }
 0x540   : > { %v1610_v27 = vadd.f32 %v1602_v4, %v1586_v24  ;;  %v3786_v24 = vld [vmem:[%s4030_s1 + $0x70] sm:$0xff] }
 0x541   : > { %4172 = vst [vmem:[#allocation16_spill] sm:$0xff] %v3786_v24 }
 0x543   : > { %v1421_v25 = vpop.f32.mrf.mxu2 }
 0x544   : > { %v1595_v17 = vsub.f32 %v1421_v25, %v1539_v15  ;;  %v1520_v25 = vpop.f32.mrf.mxu0 }
 0x546   : > { %v1603_v20 = vmul.f32 %v1595_v17, %v3520_v48 }
 0x548   : > { %2464 = vmatmul.msk.bf16.gmra.mxu2 %vm291_vm4, %v3527_v12  ;;  %v1611_v54 = vadd.f32 %v1603_v20, %v1587_v63  ;;  %v1589_v20 = vsub.f32 %v1406_v22, %v1515_v9 }
 0x54b   : > { %v1424_v45 = vpop.f32.mrf.mxu2 }
 0x553   : > { %v1426_v10 = vpop.f32.mrf.mxu2 }
 0x554   : > { %v1597_v55 = vsub.f32 %v1426_v10, %v1544_v50  ;;  %v1523_v10 = vpop.f32.mrf.mxu0 }
 0x556   : > { %v1605_v63 = vmul.f32 %v1597_v55, %v3520_v48 }
 0x558   : > { %2465 = vmatmul.msk.bf16.gmra.mxu2 %vm291_vm4, %v3786_v24  ;;  %v1613_v53 = vadd.f32 %v1605_v63, %v1589_v20  ;;  %v1591_v63 = vsub.f32 %v3763_v16, %v1520_v25  ;;  %v1596_v24 = vsub.f32 %v1424_v45, %v1542_v57  ;;  %v2609_v25 = vld [vmem:[#allocation8 + $0x38] sm:$0xff] }
 0x55b   : > { %v1429_v26 = vpop.f32.mrf.mxu2 }
 0x55c   : > { %v1598_v15 = vsub.f32 %v1429_v26, %v1547_v41  ;;  %v1552_v41 = vpop.f32.mrf.mxu1  ;;  %v1592_v26 = vsub.f32 %v1414_v7, %v1523_v10  ;;  %v1588_v10 = vsub.f32 %v3754_v42, %v1513_v31 }
 0x55e   : > { %v1606_v12 = vmul.f32 %v1598_v15, %v3520_v48 }
 0x560   : > { %v1614_v4 = vadd.f32 %v1606_v12, %v1590_v59 }
 0x562   : > { %1626 = vrot.lane.b32.xlu0 %v1614_v4, %s2723_s29 }
 0x563   : > { %v1431_v17 = vpop.f32.mrf.mxu2 }
 0x564   : > { %v1599_v59 = vsub.f32 %v1431_v17, %v1549_v8  ;;  %v1554_v9 = vpop.f32.mrf.mxu1 }
 0x566   : > { %v1607_v55 = vmul.f32 %v1599_v59, %v3520_v48 }
 0x568   : > { %2466 = vmatmul.msk.bf16.gmra.mxu2 %vm291_vm4, %v3796_v58  ;;  %v1525_v58 = vpop.f32.mrf.mxu0  ;;  %v1615_v7 = vadd.f32 %v1607_v55, %v1591_v63  ;;  %v2615_v63 = vld [vmem:[#allocation8 + $0x8] sm:$0xff] }
 0x569   : > { %v1593_v20 = vsub.f32 %v1416_v21, %v1525_v58 }
 0x56a   : > { %1624 = vrot.lane.b32.xlu0 %v1613_v53, %s2723_s29 }
 0x56b   : > { %v1434_v50 = vpop.f32.mrf.mxu2 }
 0x56c   : > { %v1600_v30 = vsub.f32 %v1434_v50, %v1552_v41  ;;  %v1604_v41 = vmul.f32 %v1596_v24, %v3520_v48 }
 0x56e   : > { %v1608_v15 = vmul.f32 %v1600_v30, %v3520_v48  ;;  %v1612_v50 = vadd.f32 %v1604_v41, %v1588_v10 }
 0x570   : > { %v1616_v22 = vadd.f32 %v1608_v15, %v1592_v26  ;;  %v2610_v26 = vld [vmem:[#allocation8 + $0x30] sm:$0xff]  ;;  %v2611_v15 = vld [vmem:[#allocation8 + $0x28] sm:$0xff] }
 0x572   : > { %1630 = vrot.lane.b32.xlu1 %v1616_v22, %s2723_s29  ;;  %v2612_v22 = vld [vmem:[#allocation8 + $0x20] sm:$0xff] }
 0x573   : > { %v1436_v12 = vpop.f32.mrf.mxu2 }
 0x574   : > { %v1601_v4 = vsub.f32 %v1436_v12, %v1554_v9  ;;  %v2613_v12 = vld [vmem:[#allocation8 + $0x18] sm:$0xff] }
 0x576   : > { %v1609_v53 = vmul.f32 %v1601_v4, %v3520_v48  ;;  %v2614_v4 = vld [vmem:[#allocation8 + $0x10] sm:$0xff] }
 0x578   : > { %2467 = vmatmul.msk.bf16.gmra.mxu2 %vm291_vm4, %v3548_v37  ;;  %v1617_v8 = vadd.f32 %v1609_v53, %v1593_v20  ;;  %v3818_v37 = vld [vmem:[%s4030_s1 + $0x88] sm:$0xff]  ;;  %v2616_v53 = vld [vmem:[#allocation8] sm:$0xff] }
 0x57a   : > { %1628 = vrot.lane.b32.xlu1 %v1615_v7, %s2723_s29  ;;  %1632 = vrot.lane.b32.xlu2 %v1617_v8, %s2723_s29 }
 0x57b   : > { %v1439_v17 = vpop.f32.mrf.mxu2 }
 0x582   : > { %1618 = vrot.lane.b32.xlu1 %v1610_v27, %s2723_s29  ;;  %1622 = vrot.lane.b32.xlu2 %v1612_v50, %s2723_s29 }
 0x583   : > { %v1441_v58 = vpop.f32.mrf.mxu2 }
 0x584   : > { %v1642_v16 = vpack.c.bf16 %v1441_v58, %v1439_v17 }
 0x586   : > { %1658 = vmatmul.bf16.vlgmr.msra.gmra.mxu1 %v1642_v16 }
 0x587   : > { %1935 = vmatpush.bf16.msra.mxu1 %v3012_v23  ;;  %v3830_v23 = vld [vmem:[%s4030_s1 + $0x90] sm:$0xff] }
 0x588   : > { %2468 = vmatmul.msk.bf16.gmra.mxu2 %vm291_vm4, %v3818_v37 }
 0x58a   : > { %1620 = vrot.lane.b32.xlu2 %v1611_v54, %s2723_s29 }
 0x58b   : > { %v1444_v42 = vpop.f32.mrf.mxu2  ;;  %1936 = vmatpush.bf16.msra.mxu1 %v3027_v36 }
 0x58f   : > { %1937 = vmatpush.bf16.msra.mxu1 %v3061_v51  ;;  %v4174_v51 = vld [vmem:[#allocation40_spill] sm:$0xff] }
 0x593   : > { %v1446_v21 = vpop.f32.mrf.mxu2  ;;  %1938 = vmatpush.bf16.msra.mxu1 %v3074_v60 }
 0x594   : > { %v1644_v27 = vpack.c.bf16 %v1446_v21, %v1444_v42  ;;  %v1566_v42 = vpop.f32.mrf.mxu0 }
 0x596   : > { %1663 = vmatmul.bf16.gmra.mxu1 %v1644_v27 }
 0x597   : > { %1939 = vmatpush.bf16.msra.mxu1 %v3084_v1  ;;  %v3840_v1 = vld [vmem:[%s4030_s1 + $0x98] sm:$0xff] }
 0x598   : > { %2469 = vmatmul.msk.bf16.gmra.mxu2 %vm291_vm4, %v3830_v23 }
 0x59b   : > { %v1449_v57 = vpop.f32.mrf.mxu2  ;;  %1940 = vmatpush.bf16.msra.mxu1 %v3094_v5 }
 0x59f   : > { %1941 = vmatpush.bf16.msra.mxu1 %v3115_v14 }
 0x5a3   : > { %v1451_v36 = vpop.f32.mrf.mxu2  ;;  %1942 = vmatpush.bf16.msra.mxu1 %v4174_v51  ;;  %v1568_v51 = vpop.f32.mrf.mxu0 }
 0x5a4   : > { %v1646_v60 = vpack.c.bf16 %v1451_v36, %v1449_v57 }
 0x5a6   : > { %1668 = vmatmul.bf16.gmra.mxu1 %v1646_v60 }
 0x5a8   : > { %2470 = vmatmul.msk.bf16.gmra.mxu2 %vm291_vm4, %v3840_v1 }
 0x5ab   : > { %v1454_v31 = vpop.f32.mrf.mxu2 }
 0x5b3   : > { %v1456_v54 = vpop.f32.mrf.mxu2 }
 0x5b4   : > { %v1648_v45 = vpack.c.bf16 %v1456_v54, %v1454_v31  ;;  %v3850_v54 = vld [vmem:[#allocation3] sm:$0xff] }
 0x5b6   : > { %1673 = vmatmul.bf16.gmra.mxu1 %v1648_v45 }
 0x5bb   : > { %v1459_v5 = vpop.f32.mrf.mxu2 }
 0x5c3   : > { %v1461_v24 = vpop.f32.mrf.mxu2 }
 0x5c4   : > { %v1643_v14 = vpack.c.bf16 %v1461_v24, %v1459_v5  ;;  %v1354_v24 = vmul.f32 2.0, %v3605_v49  ;;  %v1355_v49 = vmul.f32 2.0, %v3608_v3 }
 0x5c6   : > { %1687 = vmatmul.bf16.vlgmr.msrb.gmra.mxu3 %v1643_v14 }
 0x5c7   : > { %2028 = vmatpush.bf16.msrb.mxu3 %v2609_v25 }
 0x5cb   : > { %v1464_v30 = vpop.f32.mrf.mxu2  ;;  %2029 = vmatpush.bf16.msrb.mxu3 %v2610_v26 }
 0x5cf   : > { %2030 = vmatpush.bf16.msrb.mxu3 %v2611_v15 }
 0x5d3   : > { %v1466_v59 = vpop.f32.mrf.mxu2  ;;  %2031 = vmatpush.bf16.msrb.mxu3 %v2612_v22  ;;  %v4175_v22 = vld [vmem:[#allocation53_spill] sm:$0xff] }
 0x5d4   : > { %v1645_v9 = vpack.c.bf16 %v1466_v59, %v1464_v30  ;;  %v3846_v58 = vpop.permute.xlu2 %1632 }
 0x5d6   : > { %1692 = vmatmul.bf16.gmra.mxu3 %v1645_v9  ;;  %v1362_v9 = vadd.f32 %v1354_v24, %v4175_v22  ;;  %v3862_v24 = vld [vmem:[#allocation3 + $0x10] sm:$0xff]  ;;  %v1356_v22 = vmul.f32 2.0, %v3624_v34 }
 0x5d7   : > { %2032 = vmatpush.bf16.msrb.mxu3 %v2613_v12 }
 0x5db   : > { %v1469_v55 = vpop.f32.mrf.mxu2  ;;  %2033 = vmatpush.bf16.msrb.mxu3 %v2614_v4 }
 0x5dc   : > { %v1623_v57 = vpop.permute.xlu2 %1622 }
 0x5df   : > { %2034 = vmatpush.bf16.msrb.mxu3 %v2615_v63  ;;  %v3855_v63 = vld [vmem:[#allocation3 + $0x18] sm:$0xff] }
 0x5e3   : > { %v1471_v20 = vpop.f32.mrf.mxu2  ;;  %2035 = vmatpush.bf16.msrb.mxu3 %v2616_v53 }
 0x5e4   : > { %v1647_v7 = vpack.c.bf16 %v1471_v20, %v1469_v55  ;;  %v3844_v10 = vpop.permute.xlu1 %1630  ;;  %v1621_v15 = vpop.permute.xlu2 %1620 }
 0x5e5   : > { %v1571_v55 = vpop.f32.mrf.mxu0  ;;  %v1635_v20 = vmul.f32 %v3855_v63, %v1621_v15 }
 0x5e6   : > { %1697 = vmatmul.bf16.gmra.mxu3 %v1647_v7 }
 0x5eb   : > { %v1474_v8 = vpop.f32.mrf.mxu2 }
 0x5ec   : > { %v3848_v21 = vpop.permute.xlu1 %1628 }
 0x5f3   : > { %v1476_v17 = vpop.f32.mrf.mxu2 }
 0x5f4   : > { %v1649_v41 = vpack.c.bf16 %v1476_v17, %v1474_v8  ;;  %v1619_v60 = vpop.permute.xlu1 %1618 }
 0x5f5   : > { %v1634_v45 = vmul.f32 %v3850_v54, %v1619_v60 }
 0x5f6   : > { %1702 = vmatmul.bf16.gmra.mxu3 %v1649_v41  ;;  %v1627_v41 = vpop.permute.xlu0 %1626 }
 0x5fb   : > { %v1479_v50 = vpop.f32.mrf.mxu2 }
 0x5fc   : > { %v1716_v14 = vadd.f32 %v1566_v42, %v1479_v50  ;;  %v4176_v42 = vld [vmem:[#allocation54_spill] sm:$0xff] }
 0x5fd   : > { %v1363_v60 = vadd.f32 %v1355_v49, %v4176_v42  ;;  %v1357_v42 = vmul.f32 2.0, %v3628_v56 }
 0x603   : > { %v1659_v16 = vpop.f32.mrf.mxu1  ;;  %v1481_v27 = vpop.f32.mrf.mxu2 }
 0x604   : > { %v1717_v8 = vadd.f32 %v1568_v51, %v1481_v27 }
 0x60b   : > { %v1661_v36 = vpop.f32.mrf.mxu1  ;;  %v1484_v30 = vpop.f32.mrf.mxu2 }
 0x613   : > { %v1664_v59 = vpop.f32.mrf.mxu1 }
 0x649   : > { %v1688_v31 = vpop.f32.mrf.mxu3 }
 0x64a   : > { %v1689_v5 = vadd.f32 %v1688_v31, %v1659_v16  ;;  %v1486_v31 = vpop.f32.mrf.mxu2 }
 0x64c   : > { %v1708_v25 = vadd.f32 %v1689_v5, %v1634_v45 }
 0x64e   : > { %v1724_v26 = vadd.f32 %v1716_v14, %v1708_v25  ;;  %v1636_v14 = vmul.f32 %v3862_v24, %v1623_v57  ;;  %v1666_v25 = vpop.f32.mrf.mxu1  ;;  %v1625_v57 = vpop.permute.xlu0 %1624 }
 0x650   : > { %v1732_v12 = vmul.f32 2.0, %v1724_v26  ;;  %v1748_v50 = vmul.f32 0.071428575, %v1724_v26  ;;  %v1573_v26 = vpop.f32.mrf.mxu0 }
 0x651   : > { %v1690_v4 = vpop.f32.mrf.mxu3 }
 0x652   : > { %v1691_v53 = vadd.f32 %v1690_v4, %v1661_v36  ;;  %v3858_v7 = vadd.f32 %v1732_v12, %v1362_v9  ;;  %v1756_v15 = vadd.f32 %v3611_v19, %v1748_v50  ;;  %v1718_v9 = vadd.f32 %v1571_v55, %v1484_v30  ;;  %v4177_v19 = vld [vmem:[#allocation22_spill] sm:$0xff]  ;;  %v1489_v30 = vpop.f32.mrf.mxu2 }
 0x654   : > { %v1709_v17 = vadd.f32 %v1691_v53, %v1635_v20  ;;  %v2620_v53 = vld [vmem:[#allocation8 + $0x78] sm:$0xff] }
 0x656   : > { %v1725_v16 = vadd.f32 %v1717_v8, %v1709_v17  ;;  %v3875_v8 = vld [vmem:[#allocation3 + $0x20] sm:$0xff]  ;;  %v1669_v50 = vpop.f32.mrf.mxu1 }
 0x657   : > { %v1637_v34 = vmul.f32 %v3875_v8, %v1625_v57 }
 0x658   : > { %v1733_v45 = vmul.f32 2.0, %v1725_v16  ;;  %v1749_v5 = vmul.f32 0.071428575, %v1725_v16  ;;  %v2622_v16 = vld [vmem:[#allocation8 + $0x70] sm:$0xff] }
 0x659   : > { %v1693_v36 = vpop.f32.mrf.mxu3 }
 0x65a   : > { %v1757_v3 = vadd.f32 %v3614_v28, %v1749_v5  ;;  %v1694_v27 = vadd.f32 %v1693_v36, %v1664_v59  ;;  %v3867_v51 = vadd.f32 %v1733_v45, %v1363_v60  ;;  %v1364_v28 = vadd.f32 %v1356_v22, %v4177_v19  ;;  %v1576_v5 = vpop.f32.mrf.mxu0 }
 0x65b   : > { %v1719_v60 = vadd.f32 %v1573_v26, %v1486_v31  ;;  %v1358_v19 = vmul.f32 2.0, %v3645_v35 }
 0x65c   : > { %v3870_v12 = vpack.c.bf16 %v1757_v3, %v1756_v15  ;;  %v1710_v4 = vadd.f32 %v1694_v27, %v1636_v14  ;;  %v2623_v15 = vld [vmem:[#allocation8 + $0x68] sm:$0xff]  ;;  %v4178_v3 = vld [vmem:[#allocation23_spill] sm:$0xff] }
 0x65d   : > { %v1365_v27 = vadd.f32 %v1357_v42, %v4178_v3 }
 0x65e   : > { %v1726_v20 = vadd.f32 %v1718_v9, %v1710_v4  ;;  %1885 = vmatmul.bf16.vlgmr.msrb.gmra.mxu1 %v3870_v12  ;;  %1914 = vmatmul.bf16.vlgmr.msra.gmra.mxu3 %v3870_v12  ;;  %v3882_v4 = vld [vmem:[#allocation3 + $0x28] sm:$0xff] }
 0x65f   : > { %2057 = vmatpush.bf16.msrb.mxu1 %v2620_v53 }
 0x660   : > { %v1734_v59 = vmul.f32 2.0, %v1726_v20  ;;  %v1750_v14 = vmul.f32 0.071428575, %v1726_v20  ;;  %v2625_v20 = vld [vmem:[#allocation8 + $0x60] sm:$0xff] }
 0x661   : > { %v1695_v49 = vpop.f32.mrf.mxu3 }
 0x662   : > { %v1696_v55 = vadd.f32 %v1695_v49, %v1666_v25  ;;  %v3878_v17 = vadd.f32 %v1734_v59, %v1364_v28  ;;  %v1638_v25 = vmul.f32 %v3882_v4, %v1627_v41  ;;  %v1758_v53 = vadd.f32 %v3632_v40, %v1750_v14  ;;  %v1491_v59 = vpop.f32.mrf.mxu2  ;;  %v1578_v40 = vpop.f32.mrf.mxu0  ;;  %v4179_v41 = vld [vmem:[#allocation47_spill] sm:$0xff] }
 0x663   : > { %2058 = vmatpush.bf16.msrb.mxu1 %v2622_v16  ;;  %v1720_v28 = vadd.f32 %v1576_v5, %v1489_v30  ;;  %v2628_v14 = vld [vmem:[#allocation8 + $0x50] sm:$0xff] }
 0x664   : > { %v1711_v45 = vadd.f32 %v1696_v55, %v1637_v34  ;;  %v1671_v55 = vpop.f32.mrf.mxu1 }
 0x666   : > { %v1727_v36 = vadd.f32 %v1719_v60, %v1711_v45  ;;  %v3895_v45 = vld [vmem:[#allocation3 + $0x8] sm:$0xff] }
 0x667   : > { %2059 = vmatpush.bf16.msrb.mxu1 %v2623_v15  ;;  %v1639_v35 = vmul.f32 %v3895_v45, %v3848_v21  ;;  %v1721_v15 = vadd.f32 %v1578_v40, %v1491_v59  ;;  %v2631_v40 = vld [vmem:[#allocation8 + $0x40] sm:$0xff] }
 0x668   : > { %v1735_v22 = vmul.f32 2.0, %v1727_v36  ;;  %v1751_v9 = vmul.f32 0.071428575, %v1727_v36  ;;  %v1359_v36 = vmul.f32 2.0, %v3651_v32 }
 0x669   : > { %v1698_v57 = vpop.f32.mrf.mxu3 }
 0x66a   : > { %v1759_v56 = vadd.f32 %v3635_v33, %v1751_v9  ;;  %v1699_v31 = vadd.f32 %v1698_v57, %v1669_v50  ;;  %v3887_v26 = vadd.f32 %v1735_v22, %v1365_v27  ;;  %v2626_v33 = vld [vmem:[#allocation8 + $0x58] sm:$0xff]  ;;  %v1366_v50 = vadd.f32 %v1358_v19, %v4179_v41  ;;  %v1494_v27 = vpop.f32.mrf.mxu2  ;;  %v2629_v57 = vld [vmem:[#allocation8 + $0x48] sm:$0xff]  ;;  %v1581_v21 = vpop.f32.mrf.mxu0  ;;  %v3903_v19 = vld [vmem:[#allocation3 + $0x30] sm:$0xff] }
 0x66b   : > { %2060 = vmatpush.bf16.msrb.mxu1 %v2625_v20  ;;  %v1722_v41 = vadd.f32 %v1581_v21, %v1494_v27  ;;  %v1361_v27 = vmul.f32 2.0, %v3673_v43 }
 0x66c   : > { %v1712_v49 = vadd.f32 %v1699_v31, %v1638_v25  ;;  %v3890_v34 = vpack.c.bf16 %v1759_v56, %v1758_v53  ;;  %v1674_v25 = vpop.f32.mrf.mxu1  ;;  %v4180_v53 = vld [vmem:[#allocation48_spill] sm:$0xff] }
 0x66d   : > { %v1367_v56 = vadd.f32 %v1359_v36, %v4180_v53 }
 0x66e   : > { %v1728_v16 = vadd.f32 %v1720_v28, %v1712_v49  ;;  %1890 = vmatmul.bf16.gmra.mxu1 %v3890_v34  ;;  %1919 = vmatmul.bf16.gmra.mxu3 %v3890_v34  ;;  %v1640_v28 = vmul.f32 %v3903_v19, %v3844_v10 }
 0x66f   : > { %2061 = vmatpush.bf16.msrb.mxu1 %v2626_v33  ;;  %v1360_v33 = vmul.f32 2.0, %v3668_v13 }
 0x670   : > { %v1736_v42 = vmul.f32 2.0, %v1728_v16  ;;  %v1752_v22 = vmul.f32 0.071428575, %v1728_v16 }
 0x671   : > { %v1700_v60 = vpop.f32.mrf.mxu3 }
 0x672   : > { %v1701_v30 = vadd.f32 %v1700_v60, %v1671_v55  ;;  %v3899_v5 = vadd.f32 %v1736_v42, %v1366_v50  ;;  %v1760_v32 = vadd.f32 %v3655_v62, %v1752_v22  ;;  %v1583_v13 = vpop.f32.mrf.mxu0 }
 0x673   : > { %2062 = vmatpush.bf16.msrb.mxu1 %v2628_v14 }
 0x674   : > { %v1713_v3 = vadd.f32 %v1701_v30, %v1639_v35  ;;  %v4181_v35 = vld [vmem:[#allocation19_spill] sm:$0xff]  ;;  %v1496_v30 = vpop.f32.mrf.mxu2  ;;  %v1676_v62 = vpop.f32.mrf.mxu1 }
 0x675   : > { %v1368_v10 = vadd.f32 %v1360_v33, %v4181_v35  ;;  %v4185_v33 = vld [vmem:[#allocation15_spill] sm:$0xff] }
 0x676   : > { %v1729_v9 = vadd.f32 %v1721_v15, %v1713_v3 }
 0x677   : > { %2063 = vmatpush.bf16.msrb.mxu1 %v2629_v57 }
 0x678   : > { %v1737_v31 = vmul.f32 2.0, %v1729_v9  ;;  %v1753_v20 = vmul.f32 0.071428575, %v1729_v9  ;;  %v1723_v9 = vadd.f32 %v1583_v13, %v1496_v30 }
 0x679   : > { %v1703_v49 = vpop.f32.mrf.mxu3 }
 0x67a   : > { %v1761_v59 = vadd.f32 %v3658_v46, %v1753_v20  ;;  %v1704_v55 = vadd.f32 %v1703_v49, %v1674_v25  ;;  %v3909_v16 = vadd.f32 %v1737_v31, %v1367_v56  ;;  %v3913_v46 = vld [vmem:[#allocation3 + $0x38] sm:$0xff] }
 0x67b   : > { %2064 = vmatpush.bf16.msrb.mxu1 %v2631_v40  ;;  %v1641_v15 = vmul.f32 %v3913_v46, %v3846_v58  ;;  %v4182_v56 = vld [vmem:[#allocation20_spill] sm:$0xff] }
 0x67c   : > { %v1714_v50 = vadd.f32 %v1704_v55, %v1640_v28  ;;  %v1766_v42 = vpack.c.bf16 %v1761_v59, %v1760_v32  ;;  %v1369_v31 = vadd.f32 %v1361_v27, %v4182_v56 }
 0x67e   : > { %v1730_v60 = vadd.f32 %v1722_v41, %v1714_v50  ;;  %1895 = vmatmul.bf16.gmra.mxu1 %v1766_v42  ;;  %1924 = vmatmul.bf16.gmra.mxu3 %v1766_v42 }
 0x680   : > { %v1738_v14 = vmul.f32 2.0, %v1730_v60  ;;  %v1754_v57 = vmul.f32 0.071428575, %v1730_v60 }
 0x681   : > { %v1705_v36 = vpop.f32.mrf.mxu3 }
 0x682   : > { %v1706_v3 = vadd.f32 %v1705_v36, %v1676_v62  ;;  %v3917_v22 = vadd.f32 %v1738_v14, %v1368_v10  ;;  %v1762_v28 = vadd.f32 %v3676_v18, %v1754_v57 }
 0x684   : > { %v1715_v25 = vadd.f32 %v1706_v3, %v1641_v15 }
 0x686   : > { %v1731_v53 = vadd.f32 %v1723_v9, %v1715_v25  ;;  %v2633_v9 = vld [vmem:[%s4030_s1 + $0x68] sm:$0xff] }
 0x688   : > { %v1739_v20 = vmul.f32 2.0, %v1731_v53  ;;  %v1755_v21 = vmul.f32 0.071428575, %v1731_v53 }
 0x68a   : > { %v1763_v49 = vadd.f32 %v3679_v47, %v1755_v21  ;;  %v3923_v32 = vadd.f32 %v1739_v20, %v1369_v31 }
 0x68c   : > { %v1767_v58 = vpack.c.bf16 %v1763_v49, %v1762_v28 }
 0x68e   : > { %1772 = vmatpush.bf16.msrb.mxu0 %v1767_v58  ;;  %1900 = vmatmul.bf16.gmra.mxu1 %v1767_v58 }
 0x68f   : > { %1929 = vmatmul.bf16.gmra.mxu3 %v1767_v58 }
 0x692   : > { %1773 = vmatpush.bf16.msrb.mxu0 %v1766_v42 }
 0x696   : > { %1774 = vmatpush.bf16.msrb.mxu0 %v3890_v34 }
 0x69a   : > { %1775 = vmatpush.bf16.msrb.mxu0 %v3870_v12 }
 0x69d   : > { %2471 = vmatmul.msk.bf16.vlgmr.msrb.gmra.mxu0 %vm291_vm4, %v3686_v2 }
 0x69e   : > { %1943 = vmatmul.bf16.vlgmr.msra.gmra.mxu1 %v3870_v12 }
 0x6ad   : > { %2472 = vmatmul.msk.bf16.gmra.mxu0 %vm291_vm4, %v3694_v52 }
 0x6ae   : > { %1948 = vmatmul.bf16.gmra.mxu1 %v3890_v34 }
 0x6bd   : > { %2473 = vmatmul.msk.bf16.gmra.mxu0 %vm291_vm4, %v3701_v29  ;;  %v4183_v29 = vld [vmem:[#allocation49_spill] sm:$0xff] }
 0x6be   : > { %1953 = vmatmul.bf16.gmra.mxu1 %v1766_v42 }
 0x6cd   : > { %2474 = vmatmul.msk.bf16.gmra.mxu0 %vm291_vm4, %v3708_v44 }
 0x6ce   : > { %1958 = vmatmul.bf16.gmra.mxu1 %v1767_v58 }
 0x6dd   : > { %2475 = vmatmul.msk.bf16.gmra.mxu0 %vm291_vm4, %v3715_v0 }
 0x6ed   : > { %2476 = vmatmul.msk.bf16.gmra.mxu0 %vm291_vm4, %v3722_v38  ;;  %v1915_v38 = vpop.f32.mrf.mxu3 }
 0x6fd   : > { %2477 = vmatmul.msk.bf16.gmra.mxu0 %vm291_vm4, %v3729_v6  ;;  %v4184_v6 = vld [vmem:[#allocation50_spill] sm:$0xff] }
 0x70d   : > { %2478 = vmatmul.msk.bf16.gmra.mxu0 %vm291_vm4, %v3736_v11  ;;  %v1886_v11 = vpop.f32.mrf.mxu1 }
 0x715   : > { %v1888_v34 = vpop.f32.mrf.mxu1 }
 0x71a   : > { %v1777_v43 = vpop.f32.mrf.mxu0 }
 0x71d   : > { %2479 = vmatmul.msk.bf16.gmra.mxu0 %vm291_vm4, %v3743_v39  ;;  %v1917_v39 = vpop.f32.mrf.mxu3  ;;  %v1891_v42 = vpop.f32.mrf.mxu1 }
 0x722   : > { %v1779_v18 = vpop.f32.mrf.mxu0 }
 0x723   : > { %v1965_v10 = vsub.f32 %v1779_v18, %v1888_v34 }
 0x725   : > { %v1920_v50 = vpop.f32.mrf.mxu3  ;;  %v1893_v3 = vpop.f32.mrf.mxu1 }
 0x72a   : > { %v1782_v47 = vpop.f32.mrf.mxu0 }
 0x72b   : > { %v1966_v13 = vsub.f32 %v1782_v47, %v1891_v42  ;;  %v4186_v47 = vld [vmem:[#allocation16_spill] sm:$0xff] }
 0x72d   : > { %2480 = vmatmul.msk.bf16.gmra.mxu0 %vm291_vm4, %v3750_v61  ;;  %v1964_v61 = vsub.f32 %v1777_v43, %v1886_v11  ;;  %v1922_v62 = vpop.f32.mrf.mxu3  ;;  %v1896_v21 = vpop.f32.mrf.mxu1 }
 0x732   : > { %v1784_v2 = vpop.f32.mrf.mxu0 }
 0x733   : > { %v1967_v31 = vsub.f32 %v1784_v2, %v1893_v3 }
 0x735   : > { %v1925_v56 = vpop.f32.mrf.mxu3 }
 0x73a   : > { %v1787_v52 = vpop.f32.mrf.mxu0 }
 0x73b   : > { %v1968_v43 = vsub.f32 %v1787_v52, %v1896_v21 }
 0x73d   : > { %2481 = vmatmul.msk.bf16.gmra.mxu0 %vm291_vm4, %v4183_v29  ;;  %v1927_v29 = vpop.f32.mrf.mxu3 }
 0x742   : > { %v1789_v44 = vpop.f32.mrf.mxu0 }
 0x74a   : > { %v3951_v0 = vpop.f32.mrf.mxu0 }
 0x74d   : > { %2482 = vmatmul.msk.bf16.gmra.mxu0 %vm291_vm4, %v4184_v6  ;;  %v1898_v6 = vpop.f32.mrf.mxu1 }
 0x752   : > { %v3955_v12 = vpop.f32.mrf.mxu0 }
 0x755   : > { %v1901_v52 = vpop.f32.mrf.mxu1 }
 0x75a   : > { %v1797_v59 = vpop.f32.mrf.mxu0 }
 0x75b   : > { %v1972_v55 = vsub.f32 %v1797_v59, %v1915_v38 }
 0x75d   : > { %v1980_v40 = vmul.f32 %v1972_v55, %v3520_v48  ;;  %2483 = vmatmul.msk.bf16.gmra.mxu0 %vm291_vm4, %v4185_v33  ;;  %v1930_v55 = vpop.f32.mrf.mxu3  ;;  %v1970_v33 = vsub.f32 %v3951_v0, %v1901_v52 }
 0x75f   : > { %v1988_v41 = vadd.f32 %v1980_v40, %v1964_v61 }
 0x761   : > { %1996 = vrot.lane.b32.xlu0 %v1988_v41, %s2723_s29 }
 0x762   : > { %v1799_v60 = vpop.f32.mrf.mxu0 }
 0x763   : > { %v1973_v35 = vsub.f32 %v1799_v60, %v1917_v39  ;;  %v1969_v39 = vsub.f32 %v1789_v44, %v1898_v6 }
 0x765   : > { %v1981_v30 = vmul.f32 %v1973_v35, %v3520_v48  ;;  %v1932_v44 = vpop.f32.mrf.mxu3 }
 0x767   : > { %v1989_v14 = vadd.f32 %v1981_v30, %v1965_v10  ;;  %v1903_v10 = vpop.f32.mrf.mxu1 }
 0x768   : > { %v1971_v30 = vsub.f32 %v3955_v12, %v1903_v10 }
 0x769   : > { %1998 = vrot.lane.b32.xlu1 %v1989_v14, %s2723_s29 }
 0x76a   : > { %v1802_v36 = vpop.f32.mrf.mxu0 }
 0x76b   : > { %v1974_v15 = vsub.f32 %v1802_v36, %v1920_v50  ;;  %v4187_v50 = vld [vmem:[#allocation51_spill] sm:$0xff]  ;;  %v2634_v36 = vld [vmem:[%s4030_s1 + $0x80] sm:$0xff] }
 0x76d   : > { %v1982_v27 = vmul.f32 %v1974_v15, %v3520_v48  ;;  %2484 = vmatmul.msk.bf16.gmra.mxu0 %vm291_vm4, %v2633_v9 }
 0x76f   : > { %v1990_v25 = vadd.f32 %v1982_v27, %v1966_v13 }
 0x771   : > { %2000 = vrot.lane.b32.xlu2 %v1990_v25, %s2723_s29 }
 0x772   : > { %v1804_v57 = vpop.f32.mrf.mxu0 }
 0x773   : > { %v1975_v53 = vsub.f32 %v1804_v57, %v1922_v62 }
 0x775   : > { %v1983_v20 = vmul.f32 %v1975_v53, %v3520_v48 }
 0x777   : > { %v1991_v28 = vadd.f32 %v1983_v20, %v1967_v31 }
 0x779   : > { %2002 = vrot.lane.b32.xlu0 %v1991_v28, %s2723_s29 }
 0x77a   : > { %v1807_v49 = vpop.f32.mrf.mxu0 }
 0x77b   : > { %v1976_v58 = vsub.f32 %v1807_v49, %v1925_v56 }
 0x77d   : > { %v1984_v18 = vmul.f32 %v1976_v58, %v3520_v48  ;;  %2485 = vmatmul.msk.bf16.gmra.mxu0 %vm291_vm4, %v4186_v47 }
 0x77f   : > { %v1992_v38 = vadd.f32 %v1984_v18, %v1968_v43 }
 0x781   : > { %2004 = vrot.lane.b32.xlu1 %v1992_v38, %s2723_s29  ;;  %v1944_v38 = vpop.f32.mrf.mxu1 }
 0x782   : > { %v1809_v2 = vpop.f32.mrf.mxu0 }
 0x783   : > { %v1977_v11 = vsub.f32 %v1809_v2, %v1927_v29 }
 0x785   : > { %v1985_v34 = vmul.f32 %v1977_v11, %v3520_v48 }
 0x787   : > { %v1993_v59 = vadd.f32 %v1985_v34, %v1969_v39 }
 0x789   : > { %2006 = vrot.lane.b32.xlu2 %v1993_v59, %s2723_s29 }
 0x78a   : > { %v1812_v61 = vpop.f32.mrf.mxu0 }
 0x78b   : > { %v1978_v40 = vsub.f32 %v1812_v61, %v1930_v55 }
 0x78d   : > { %v1986_v41 = vmul.f32 %v1978_v40, %v3520_v48  ;;  %2486 = vmatmul.msk.bf16.gmra.mxu0 %vm291_vm4, %v4187_v50 }
 0x78f   : > { %v1994_v42 = vadd.f32 %v1986_v41, %v1970_v33 }
 0x791   : > { %2008 = vrot.lane.b32.xlu0 %v1994_v42, %s2723_s29 }
 0x792   : > { %v1814_v60 = vpop.f32.mrf.mxu0 }
 0x793   : > { %v1979_v35 = vsub.f32 %v1814_v60, %v1932_v44 }
 0x795   : > { %v1987_v14 = vmul.f32 %v1979_v35, %v3520_v48 }
 0x797   : > { %v1995_v62 = vadd.f32 %v1987_v14, %v1971_v30 }
 0x799   : > { %2010 = vrot.lane.b32.xlu1 %v1995_v62, %s2723_s29 }
 0x79a   : > { %v1817_v0 = vpop.f32.mrf.mxu0 }
 0x79d   : > { %2487 = vmatmul.msk.bf16.gmra.mxu0 %vm291_vm4, %v2634_v36 }
 0x7a2   : > { %v1819_v15 = vpop.f32.mrf.mxu0 }
 0x7a3   : > { %v2020_v3 = vpack.c.bf16 %v1819_v15, %v1817_v0 }
 0x7a5   : > { %2036 = vmatmul.bf16.vlgmr.msrb.gmra.mxu3 %v2020_v3 }
 0x7aa   : > { %v1822_v13 = vpop.f32.mrf.mxu0 }
 0x7ad   : > { %2488 = vmatmul.msk.bf16.gmra.mxu0 %vm291_vm4, %v3818_v37 }
 0x7b2   : > { %v1824_v12 = vpop.f32.mrf.mxu0 }
 0x7b3   : > { %v2022_v27 = vpack.c.bf16 %v1824_v12, %v1822_v13  ;;  %v2635_v12 = vld [vmem:[#allocation2 + $0x30] sm:$0xff] }
 0x7b5   : > { %2041 = vmatmul.bf16.gmra.mxu3 %v2022_v27 }
 0x7ba   : > { %v1827_v48 = vpop.f32.mrf.mxu0 }
 0x7bd   : > { %2489 = vmatmul.msk.bf16.gmra.mxu0 %vm291_vm4, %v3830_v23 }
 0x7c2   : > { %v1829_v9 = vpop.f32.mrf.mxu0 }
 0x7c3   : > { %v2024_v25 = vpack.c.bf16 %v1829_v9, %v1827_v48 }
 0x7c5   : > { %2046 = vmatmul.bf16.gmra.mxu3 %v2024_v25 }
 0x7ca   : > { %v1832_v57 = vpop.f32.mrf.mxu0 }
 0x7cb   : > { %v2001_v9 = vpop.permute.xlu2 %2000 }
 0x7cd   : > { %2490 = vmatmul.msk.bf16.gmra.mxu0 %vm291_vm4, %v3840_v1  ;;  %v1946_v1 = vpop.f32.mrf.mxu1 }
 0x7d2   : > { %v1834_v53 = vpop.f32.mrf.mxu0 }
 0x7d3   : > { %v2026_v56 = vpack.c.bf16 %v1834_v53, %v1832_v57  ;;  %v1997_v33 = vpop.permute.xlu0 %1996 }
 0x7d4   : > { %v2012_v50 = vmul.f32 %v3850_v54, %v1997_v33 }
 0x7d5   : > { %2051 = vmatmul.bf16.gmra.mxu3 %v2026_v56  ;;  %v1949_v6 = vpop.f32.mrf.mxu1 }
 0x7da   : > { %v1837_v31 = vpop.f32.mrf.mxu0 }
 0x7db   : > { %v1999_v30 = vpop.permute.xlu1 %1998 }
 0x7dc   : > { %v2013_v36 = vmul.f32 %v3855_v63, %v1999_v30  ;;  %v2636_v63 = vld [vmem:[#allocation2] sm:$0xff] }
 0x7dd   : > { %v1951_v2 = vpop.f32.mrf.mxu1 }
 0x7e2   : > { %v1839_v20 = vpop.f32.mrf.mxu0 }
 0x7e3   : > { %v2021_v37 = vpack.c.bf16 %v1839_v20, %v1837_v31  ;;  %v2014_v31 = vmul.f32 %v3862_v24, %v2001_v9  ;;  %v2637_v24 = vld [vmem:[#allocation2 + $0x18] sm:$0xff]  ;;  %v2007_v30 = vpop.permute.xlu2 %2006 }
 0x7e5   : > { %2065 = vmatmul.bf16.vlgmr.msrb.gmra.mxu1 %v2021_v37  ;;  %v3995_v11 = vpop.f32.mrf.mxu1 }
 0x7ea   : > { %v1842_v21 = vpop.f32.mrf.mxu0 }
 0x7ed   : > { %v3997_v39 = vpop.f32.mrf.mxu1 }
 0x7f2   : > { %v1844_v28 = vpop.f32.mrf.mxu0 }
 0x7f3   : > { %v2023_v49 = vpack.c.bf16 %v1844_v28, %v1842_v21 }
 0x7f5   : > { %2070 = vmatmul.bf16.gmra.mxu1 %v2023_v49  ;;  %v3999_v34 = vpop.f32.mrf.mxu1 }
 0x7fa   : > { %v1847_v58 = vpop.f32.mrf.mxu0 }
 0x7fd   : > { %v4001_v52 = vpop.f32.mrf.mxu1 }
 0x802   : > { %v1849_v23 = vpop.f32.mrf.mxu0 }
 0x803   : > { %v2025_v43 = vpack.c.bf16 %v1849_v23, %v1847_v58  ;;  %v2003_v58 = vpop.permute.xlu0 %2002 }
 0x805   : > { %2075 = vmatmul.bf16.gmra.mxu1 %v2025_v43 }
 0x80a   : > { %v1852_v18 = vpop.f32.mrf.mxu0 }
 0x812   : > { %v1854_v47 = vpop.f32.mrf.mxu0 }
 0x813   : > { %v2027_v29 = vpack.c.bf16 %v1854_v47, %v1852_v18  ;;  %v2015_v18 = vmul.f32 %v3875_v8, %v2003_v58  ;;  %v2641_v58 = vld [vmem:[#allocation2 + $0x28] sm:$0xff] }
 0x815   : > { %2080 = vmatmul.bf16.gmra.mxu1 %v2027_v29 }
 0x81a   : > { %v1857_v59 = vpop.f32.mrf.mxu0 }
 0x81b   : > { %v2094_v44 = vadd.f32 %v1944_v38, %v1857_v59 }
 0x822   : > { %v1859_v61 = vpop.f32.mrf.mxu0 }
 0x823   : > { %v2095_v13 = vadd.f32 %v1946_v1, %v1859_v61  ;;  %v2005_v61 = vpop.permute.xlu1 %2004 }
 0x828   : > { %v2037_v55 = vpop.f32.mrf.mxu3 }
 0x82a   : > { %v1862_v35 = vpop.f32.mrf.mxu0 }
 0x82b   : > { %v2096_v37 = vadd.f32 %v1949_v6, %v1862_v35 }
 0x830   : > { %v2039_v40 = vpop.f32.mrf.mxu3 }
 0x832   : > { %v1864_v25 = vpop.f32.mrf.mxu0 }
 0x833   : > { %v2097_v1 = vadd.f32 %v1951_v2, %v1864_v25 }
 0x838   : > { %v2042_v14 = vpop.f32.mrf.mxu3 }
 0x83a   : > { %v1867_v47 = vpop.f32.mrf.mxu0 }
 0x83b   : > { %v2098_v8 = vadd.f32 %v3995_v11, %v1867_v47 }
 0x840   : > { %v2044_v53 = vpop.f32.mrf.mxu3 }
 0x848   : > { %v2047_v38 = vpop.f32.mrf.mxu3 }
 0x850   : > { %v2049_v2 = vpop.f32.mrf.mxu3 }
 0x862   : > { %v2066_v41 = vpop.f32.mrf.mxu1 }
 0x863   : > { %v2067_v42 = vadd.f32 %v2066_v41, %v2037_v55  ;;  %v2016_v41 = vmul.f32 %v3882_v4, %v2005_v61 }
 0x865   : > { %v2086_v60 = vadd.f32 %v2067_v42, %v2012_v50  ;;  %v1869_v42 = vpop.f32.mrf.mxu0 }
 0x866   : > { %v2099_v4 = vadd.f32 %v3997_v39, %v1869_v42 }
 0x867   : > { %v2102_v10 = vadd.f32 %v2094_v44, %v2086_v60  ;;  %v2638_v44 = vld [vmem:[#allocation2 + $0x10] sm:$0xff] }
 0x869   : > { %v2110_v62 = vadd.f32 %v2102_v10, %v3858_v7 }
 0x86a   : > { %v2068_v0 = vpop.f32.mrf.mxu1 }
 0x86b   : > { %v2118_v15 = vmul.f32 0.011904762, %v2110_v62  ;;  %v2069_v3 = vadd.f32 %v2068_v0, %v2039_v40 }
 0x86d   : > { %v2126_v27 = vadd.f32 %v2635_v12, %v2118_v15  ;;  %v2087_v48 = vadd.f32 %v2069_v3, %v2013_v36  ;;  %v2639_v15 = vld [vmem:[#allocation2 + $0x8] sm:$0xff] }
 0x86f   : > { %2134 = vst [vmem:[#allocation2 + $0x30] sm:$0xff] %v2126_v27  ;;  %v2103_v54 = vadd.f32 %v2095_v13, %v2087_v48  ;;  %v1872_v13 = vpop.f32.mrf.mxu0  ;;  %v2009_v27 = vpop.permute.xlu0 %2008 }
 0x870   : > { %v2052_v48 = vpop.f32.mrf.mxu3 }
 0x871   : > { %v2111_v57 = vadd.f32 %v2103_v54, %v3867_v51 }
 0x872   : > { %v2071_v56 = vpop.f32.mrf.mxu1 }
 0x873   : > { %v2119_v7 = vmul.f32 0.011904762, %v2111_v57  ;;  %v2072_v20 = vadd.f32 %v2071_v56, %v2042_v14 }
 0x875   : > { %v2127_v21 = vadd.f32 %v2636_v63, %v2119_v7  ;;  %v2088_v28 = vadd.f32 %v2072_v20, %v2014_v31  ;;  %v2011_v7 = vpop.permute.xlu1 %2010 }
 0x877   : > { %2135 = vst [vmem:[#allocation2] sm:$0xff] %v2127_v21  ;;  %v2104_v49 = vadd.f32 %v2096_v37, %v2088_v28  ;;  %v1874_v20 = vpop.f32.mrf.mxu0 }
 0x878   : > { %v2054_v63 = vpop.f32.mrf.mxu3 }
 0x879   : > { %v2112_v23 = vadd.f32 %v2104_v49, %v3878_v17 }
 0x87a   : > { %v2073_v43 = vpop.f32.mrf.mxu1 }
 0x87b   : > { %v2120_v51 = vmul.f32 0.011904762, %v2112_v23  ;;  %v2074_v29 = vadd.f32 %v2073_v43, %v2044_v53  ;;  %v2640_v53 = vld [vmem:[#allocation2 + $0x20] sm:$0xff] }
 0x87d   : > { %v2128_v59 = vadd.f32 %v2637_v24, %v2120_v51  ;;  %v2089_v55 = vadd.f32 %v2074_v29, %v2015_v18  ;;  %v2642_v51 = vld [vmem:[#allocation2 + $0x38] sm:$0xff] }
 0x87f   : > { %2136 = vst [vmem:[#allocation2 + $0x18] sm:$0xff] %v2128_v59  ;;  %v2105_v6 = vadd.f32 %v2097_v1, %v2089_v55 }
 0x881   : > { %v2113_v40 = vadd.f32 %v2105_v6, %v3887_v26  ;;  %v2017_v26 = vmul.f32 %v3895_v45, %v2007_v30  ;;  %v2100_v45 = vadd.f32 %v3999_v34, %v1872_v13 }
 0x882   : > { %v2076_v33 = vpop.f32.mrf.mxu1 }
 0x883   : > { %v2121_v17 = vmul.f32 0.011904762, %v2113_v40  ;;  %v2077_v50 = vadd.f32 %v2076_v33, %v2047_v38 }
 0x885   : > { %v2129_v60 = vadd.f32 %v2638_v44, %v2121_v17  ;;  %v2090_v35 = vadd.f32 %v2077_v50, %v2016_v41 }
 0x887   : > { %2137 = vst [vmem:[#allocation2 + $0x10] sm:$0xff] %v2129_v60  ;;  %v2106_v10 = vadd.f32 %v2098_v8, %v2090_v35 }
 0x889   : > { %v2114_v14 = vadd.f32 %v2106_v10, %v3899_v5  ;;  %v2018_v5 = vmul.f32 %v3903_v19, %v2009_v27  ;;  %v2101_v19 = vadd.f32 %v4001_v52, %v1874_v20 }
 0x88a   : > { %v2078_v62 = vpop.f32.mrf.mxu1 }
 0x88b   : > { %v2122_v0 = vmul.f32 0.011904762, %v2114_v14  ;;  %v2079_v36 = vadd.f32 %v2078_v62, %v2049_v2 }
 0x88d   : > { %v2130_v3 = vadd.f32 %v2639_v15, %v2122_v0  ;;  %v2091_v11 = vadd.f32 %v2079_v36, %v2017_v26 }
 0x88f   : > { %2138 = vst [vmem:[#allocation2 + $0x8] sm:$0xff] %v2130_v3  ;;  %v2107_v12 = vadd.f32 %v2099_v4, %v2091_v11 }
 0x891   : > { %v2115_v54 = vadd.f32 %v2107_v12, %v3909_v16  ;;  %v2019_v16 = vmul.f32 %v3913_v46, %v2011_v7 }
 0x892   : > { %v2081_v9 = vpop.f32.mrf.mxu1 }
 0x893   : > { %v2123_v25 = vmul.f32 0.011904762, %v2115_v54  ;;  %v2082_v57 = vadd.f32 %v2081_v9, %v2052_v48 }
 0x895   : > { %v2131_v56 = vadd.f32 %v2640_v53, %v2123_v25  ;;  %v2092_v39 = vadd.f32 %v2082_v57, %v2018_v5 }
 0x897   : > { %2139 = vst [vmem:[#allocation2 + $0x20] sm:$0xff] %v2131_v56  ;;  %v2108_v31 = vadd.f32 %v2100_v45, %v2092_v39 }
 0x899   : > { %v2116_v37 = vadd.f32 %v2108_v31, %v3917_v22 }
 0x89a   : > { %v2083_v21 = vpop.f32.mrf.mxu1 }
 0x89b   : > { %v2124_v28 = vmul.f32 0.011904762, %v2116_v37  ;;  %v2084_v49 = vadd.f32 %v2083_v21, %v2054_v63 }
 0x89d   : > { %v2132_v23 = vadd.f32 %v2641_v58, %v2124_v28  ;;  %v2093_v34 = vadd.f32 %v2084_v49, %v2019_v16 }
 0x89f   : > { %2140 = vst [vmem:[#allocation2 + $0x28] sm:$0xff] %v2132_v23  ;;  %v2109_v43 = vadd.f32 %v2101_v19, %v2093_v34 }
 0x8a1   : > { %v2117_v18 = vadd.f32 %v2109_v43, %v3923_v32 }
 0x8a3   : > { %v2125_v47 = vmul.f32 0.011904762, %v2117_v18 }
 0x8a5   : > { %v2133_v29 = vadd.f32 %v2642_v51, %v2125_v47 }
 0x8a7   : > { %2141 = vst [vmem:[#allocation2 + $0x38] sm:$0xff] %v2133_v29 }
 0x8a8 PF: > { %s111_s0 = sadd.s32 1, %s2715_s0  }
 0x8a9   : > { %p108_p1 = scmp.ge.s32.totalorder %s111_s0, 8  }
 0x8aa   :  { %s2148_s25 = sshll.u32 (%p108_p1), %s4033_s4, 4  ;;  %s2724_s3 = smov (%p108_p1), [#allocation9]   ;;  %s2149_s25 = int_to_ptr.hbm [resolvable:$true] %s2148_s25 }
 0x8ab   :  { %110 = sbr.rel (!%p108_p1) target bundleno = 30 (0x1e), region = 60  ;;  %s2146_s26 = sshll.u32 (%p108_p1), %s2724_s3, 4  ;;  %s2147_s26 = int_to_ptr.vmem [resolvable:$true] %s2146_s26 }
 0x8ac   :  { %s2725_s27 = smov (%p108_p1), 128   ;;  %s2726_s28 = smov (%p108_p1), 8  }
 0x8ad   :  { %2154 = dma.vmem_to_hbm [thread:$0]  (%p108_p1), %s2147_s26, 8192, %s2149_s25, [#allocation6], %s2725_s27, %s2725_s27, %s2726_s28  }
 0x8b0   :  { %2711 = dma.done.wait [#allocation6], 8192  }
 0x8b1   :  { %2712 = vsyncadd [#allocation6], 4294959104 }
 0x8b2   :  { %2159 = vsyncpa [#allocation5], 1 }
 0x8b3   :  { %2160 = vsyncpa [#allocation6], 1 }
 0x8b4   :  { %2161 = vsyncpa [#allocation7], 1 }

</bundles_post_ra>
